<compile_context>
chip_gen: v6e
topology: v6e:2x2x1
jax: 0.10.0
libtpu: 0.0.40
codegen_flags: <defaults>
</compile_context>

<pallas_src>
import math
from functools import partial

import jax
import jax.numpy as jnp
from jax.experimental import pallas as pl
from jax.experimental.pallas import tpu as pltpu


# ----------------------------------------------------------------------------
# Generation-aware configuration (VMEM budget + tile caps)
# ----------------------------------------------------------------------------
def _tpu_generation():
    try:
        kind = jax.devices()[0].device_kind.lower()
    except Exception:
        kind = ""
    if "v5 lite" in kind or "v5e" in kind or "v5lite" in kind:
        return "v5e"
    if "v7" in kind:
        return "v7x"
    return "v6e"


_GEN = _tpu_generation()


def _vmem_budget_bytes():
    cap = None
    try:
        cap = getattr(pltpu.get_tpu_info(), "vmem_capacity_bytes", None)
    except Exception:
        cap = None
    if not cap:
        cap = (64 if _GEN == "v7x" else 128) * 1024 * 1024
    return int(cap) * 3 // 4          # headroom for compiler scratch / semaphores


_VMEM_BUDGET = _vmem_budget_bytes()

if _GEN == "v5e":
    _ROW_CAP, _TQ_CAP, _TK_CAP, _TS_CAP, _TDFF_CAP = 256, 128, 256, 256, 1024
elif _GEN == "v7x":
    _ROW_CAP, _TQ_CAP, _TK_CAP, _TS_CAP, _TDFF_CAP = 512, 256, 512, 256, 1024
else:  # v6e and other large-VMEM chips
    _ROW_CAP, _TQ_CAP, _TK_CAP, _TS_CAP, _TDFF_CAP = 512, 256, 512, 256, 2048


def _pick_tile(n, max_tile):
    """Largest divisor of n that is <= max_tile (prefers 128 / 8 multiples)."""
    if n <= max_tile:
        return n
    for step in (128, 8):
        t = (max_tile // step) * step
        while t >= step:
            if n % t == 0:
                return t
            t -= step
    # TODO(synk): pad ragged extents to a multiple of 128 instead of full-extent.
    return n


def _cparams(sem):
    return pltpu.CompilerParams(dimension_semantics=sem,
                                vmem_limit_bytes=_VMEM_BUDGET)


# ----------------------------------------------------------------------------
# Kernel 1: positional-encoding add (sqrt(d_model) pre-folded into embedding)
# ----------------------------------------------------------------------------
def _embed_pe_kernel(emb_ref, pe_ref, o_ref):
    o_ref[0] = emb_ref[0] + pe_ref[...]


def embed_and_pos_encode(tokens, emb_scaled, pe):
    # Embedding gather is glue (XLA); the PE add is tiled over (batch, seq).
    emb = jnp.take(emb_scaled, tokens, axis=0)               # (B, S, D) f32
    B, S, D = emb.shape
    ts = _pick_tile(S, _TS_CAP)
    return pl.pallas_call(
        _embed_pe_kernel,
        out_shape=jax.ShapeDtypeStruct((B, S, D), jnp.float32),
        grid=(B, S // ts),
        in_specs=[pl.BlockSpec((1, ts, D), lambda b, s: (b, s, 0)),
                  pl.BlockSpec((ts, D), lambda b, s: (s, 0))],
        out_specs=pl.BlockSpec((1, ts, D), lambda b, s: (b, s, 0)),
        compiler_params=_cparams(("parallel", "parallel")),
    )(emb, pe[:S])


# ----------------------------------------------------------------------------
# Kernel 2: row-tiled fused linear  y = bf16(x) @ W_bf16 + b  -> bf16 output
#           (used for the fused Q/K/V projection)
# ----------------------------------------------------------------------------
def _linear_kernel(x_ref, w_ref, b_ref, o_ref):
    x = x_ref[...].astype(jnp.bfloat16)
    y = jnp.dot(x, w_ref[...], preferred_element_type=jnp.float32) + b_ref[...]
    o_ref[...] = y.astype(o_ref.dtype)


def linear_rows(x2d, w_bf16, b_f32, out_dtype=jnp.bfloat16):
    N, Din = x2d.shape
    Dout = w_bf16.shape[1]
    tr = _pick_tile(N, _ROW_CAP)
    return pl.pallas_call(
        _linear_kernel,
        out_shape=jax.ShapeDtypeStruct((N, Dout), out_dtype),
        grid=(N // tr,),
        in_specs=[pl.BlockSpec((tr, Din), lambda r: (r, 0)),
                  pl.BlockSpec((Din, Dout), lambda r: (0, 0)),
                  pl.BlockSpec((1, Dout), lambda r: (0, 0))],
        out_specs=pl.BlockSpec((tr, Dout), lambda r: (r, 0)),
        compiler_params=_cparams(("parallel",)),
    )(x2d, w_bf16, b_f32)


# ----------------------------------------------------------------------------
# Kernel 3: multi-head attention.  Heads are the batch dim of one dot_general.
#   fast path : single kv tile -> plain row softmax, no scratch
#   flash path: online softmax, KV streamed over an "arbitrary" grid axis
# ----------------------------------------------------------------------------
def _attn_single_kernel(q_ref, k_ref, v_ref, mask_ref, o_ref):
    q = q_ref[0, 0]                             # (H, TQ, Dh) bf16, scale folded into Wq
    k = k_ref[0, 0]                             # (H, S,  Dh) bf16
    v = v_ref[0, 0]                             # (H, S,  Dh) bf16
    neg = (1.0 - mask_ref[0, 0]) * (-1e9)       # (S,) f32
    s = jnp.einsum('hqd,hkd->hqk', q, k,
                   preferred_element_type=jnp.float32) + neg[None, None, :]
    m = s.max(-1, keepdims=True)
    p = jnp.exp(s - m)
    l = p.sum(-1, keepdims=True)
    o = jnp.einsum('hqk,hkd->hqd', p.astype(jnp.bfloat16), v,
                   preferred_element_type=jnp.float32)
    o_ref[0] = (o * pl.reciprocal(l, approx=True)).astype(o_ref.dtype)


def _attn_flash_kernel(q_ref, k_ref, v_ref, mask_ref, o_ref, m_sc, l_sc, acc_sc):
    kv = pl.program_id(2)

    @pl.when(kv == 0)
    def _():
        m_sc[...] = jnp.full_like(m_sc, -1e30)
        l_sc[...] = jnp.zeros_like(l_sc)
        acc_sc[...] = jnp.zeros_like(acc_sc)

    q = q_ref[0, 0]                             # (H, TQ, Dh) bf16
    k = k_ref[0, 0]                             # (H, TK, Dh) bf16
    v = v_ref[0, 0]                             # (H, TK, Dh) bf16
    neg = (1.0 - mask_ref[0, 0]) * (-1e9)       # (TK,) f32

    s = jnp.einsum('hqd,hkd->hqk', q, k,
                   preferred_element_type=jnp.float32)        # (H, TQ, TK)
    s = s + neg[None, None, :]

    m_prev = m_sc[...]
    m_new = jnp.maximum(m_prev, s.max(-1, keepdims=True))
    alpha = jnp.exp(m_prev - m_new)
    p = jnp.exp(s - m_new)
    l_sc[...] = alpha * l_sc[...] + p.sum(-1, keepdims=True)
    acc_sc[...] = alpha * acc_sc[...] + jnp.einsum(
        'hqk,hkd->hqd', p.astype(jnp.bfloat16), v,
        preferred_element_type=jnp.float32)                   # (H, TQ, Dh)
    m_sc[...] = m_new

    @pl.when(kv == pl.num_programs(2) - 1)
    def _():
        o_ref[0] = (acc_sc[...] *
                    pl.reciprocal(l_sc[...], approx=True)).astype(o_ref.dtype)


def attention(qkv_t, mask3):
    # qkv_t: (B, 3, H, S, Dh) bf16 ; mask3: (B, 1, S) f32 (1=valid, 0=pad)
    B, _, H, S, Dh = qkv_t.shape
    tq = _pick_tile(S, _TQ_CAP)
    tk = _pick_tile(S, _TK_CAP)
    out_shape = jax.ShapeDtypeStruct((B, H, S, Dh), jnp.bfloat16)

    if tk == S:   # whole key sequence in one tile -> skip online-softmax machinery
        return pl.pallas_call(
            _attn_single_kernel,
            out_shape=out_shape,
            grid=(B, S // tq),
            in_specs=[pl.BlockSpec((1, 1, H, tq, Dh), lambda b, qi: (b, 0, 0, qi, 0)),
                      pl.BlockSpec((1, 1, H, S, Dh), lambda b, qi: (b, 1, 0, 0, 0)),
                      pl.BlockSpec((1, 1, H, S, Dh), lambda b, qi: (b, 2, 0, 0, 0)),
                      pl.BlockSpec((1, 1, S), lambda b, qi: (b, 0, 0))],
            out_specs=pl.BlockSpec((1, H, tq, Dh), lambda b, qi: (b, 0, qi, 0)),
            compiler_params=_cparams(("parallel", "parallel")),
        )(qkv_t, qkv_t, qkv_t, mask3)

    return pl.pallas_call(
        _attn_flash_kernel,
        out_shape=out_shape,
        grid=(B, S // tq, S // tk),
        in_specs=[pl.BlockSpec((1, 1, H, tq, Dh), lambda b, qi, ki: (b, 0, 0, qi, 0)),
                  pl.BlockSpec((1, 1, H, tk, Dh), lambda b, qi, ki: (b, 1, 0, ki, 0)),
                  pl.BlockSpec((1, 1, H, tk, Dh), lambda b, qi, ki: (b, 2, 0, ki, 0)),
                  pl.BlockSpec((1, 1, tk), lambda b, qi, ki: (b, 0, ki))],
        out_specs=pl.BlockSpec((1, H, tq, Dh), lambda b, qi, ki: (b, 0, qi, 0)),
        scratch_shapes=[pltpu.VMEM((H, tq, 1), jnp.float32),   # running max
                        pltpu.VMEM((H, tq, 1), jnp.float32),   # running denom
                        pltpu.VMEM((H, tq, Dh), jnp.float32)], # output accumulator
        compiler_params=_cparams(("parallel", "parallel", "arbitrary")),
    )(qkv_t, qkv_t, qkv_t, mask3)


# ----------------------------------------------------------------------------
# Kernel 4: per-token epilogue, tiled over (batch, seq, dff):
#   per-head Wo partial matmuls (consumes head-major context directly)
#   + residual + LN1, then dff-chunked FFN(ReLU) with a VMEM accumulator,
#   + residual + LN2.
# ----------------------------------------------------------------------------
def _post_block_kernel(ctx_ref, x_ref, wo_ref, bo_ref, g1_ref, be1_ref,
                       w1_ref, bf1_ref, w2_ref, bf2_ref, g2_ref, be2_ref,
                       o_ref, h1_sc, acc_sc, *, num_heads):
    j = pl.program_id(2)

    def layer_norm(v, g, b):  # f32 math
        mu = jnp.mean(v, axis=-1, keepdims=True)
        var = jnp.mean((v - mu) ** 2, axis=-1, keepdims=True)
        return (v - mu) * jax.lax.rsqrt(var + 1e-5) * g + b

    @pl.when(j == 0)
    def _():
        # merged-head Wo projection as a sum of per-head matmuls:
        #   attn = sum_h ctx[h] @ Wo[h]   (f32 accumulation, no relayout)
        attn = jnp.dot(ctx_ref[0, 0], wo_ref[0],
                       preferred_element_type=jnp.float32)
        for h in range(1, num_heads):
            attn = attn + jnp.dot(ctx_ref[0, h], wo_ref[h],
                                  preferred_element_type=jnp.float32)
        attn = attn + bo_ref[...]
        h1_sc[...] = layer_norm(x_ref[0] + attn, g1_ref[...], be1_ref[...])
        acc_sc[...] = jnp.zeros_like(acc_sc)

    # dff chunk: relu(h1 @ w1_j + b1_j) @ w2_j, accumulated in f32
    ff = jnp.maximum(
        jnp.dot(h1_sc[...].astype(jnp.bfloat16), w1_ref[...],
                preferred_element_type=jnp.float32) + bf1_ref[...], 0.0)
    acc_sc[...] += jnp.dot(ff.astype(jnp.bfloat16), w2_ref[...],
                           preferred_element_type=jnp.float32)

    @pl.when(j == pl.num_programs(2) - 1)
    def _():
        o_ref[0] = layer_norm(h1_sc[...] + acc_sc[...] + bf2_ref[...],
                              g2_ref[...], be2_ref[...])


def post_block(ctx, x, lp, num_heads):
    # ctx: (B, H, S, Dh) bf16 head-major ; x: (B, S, D) f32 residual stream
    B, S, D = x.shape
    H = num_heads
    Dh = D // H
    dff = lp["w1"].shape[1]
    ts = _pick_tile(S, _TS_CAP)
    tdff = _pick_tile(dff, _TDFF_CAP)

    return pl.pallas_call(
        partial(_post_block_kernel, num_heads=H),
        out_shape=jax.ShapeDtypeStruct((B, S, D), jnp.float32),
        grid=(B, S // ts, dff // tdff),
        in_specs=[pl.BlockSpec((1, H, ts, Dh), lambda b, s, j: (b, 0, s, 0)),  # ctx
                  pl.BlockSpec((1, ts, D), lambda b, s, j: (b, s, 0)),         # residual x
                  pl.BlockSpec((H, Dh, D), lambda b, s, j: (0, 0, 0)),         # wo (H,Dh,D)
                  pl.BlockSpec((1, D), lambda b, s, j: (0, 0)),                # bo
                  pl.BlockSpec((1, D), lambda b, s, j: (0, 0)),                # ln1 g
                  pl.BlockSpec((1, D), lambda b, s, j: (0, 0)),                # ln1 b
                  pl.BlockSpec((D, tdff), lambda b, s, j: (0, j)),             # w1 slice
                  pl.BlockSpec((1, tdff), lambda b, s, j: (0, j)),             # b1 slice
                  pl.BlockSpec((tdff, D), lambda b, s, j: (j, 0)),             # w2 slice
                  pl.BlockSpec((1, D), lambda b, s, j: (0, 0)),                # b2
                  pl.BlockSpec((1, D), lambda b, s, j: (0, 0)),                # ln2 g
                  pl.BlockSpec((1, D), lambda b, s, j: (0, 0))],               # ln2 b
        out_specs=pl.BlockSpec((1, ts, D), lambda b, s, j: (b, s, 0)),
        scratch_shapes=[pltpu.VMEM((ts, D), jnp.float32),    # h1 (post-LN1)
                        pltpu.VMEM((ts, D), jnp.float32)],   # FFN accumulator
        compiler_params=_cparams(("parallel", "parallel", "arbitrary")),
    )(ctx, x, lp["wo3"], lp["bo"], lp["ln1_g"], lp["ln1_b"],
      lp["w1"], lp["bf1"], lp["w2"], lp["bf2"], lp["ln2_g"], lp["ln2_b"])


# ----------------------------------------------------------------------------
# One encoder layer / full forward
# ----------------------------------------------------------------------------
def encoder_block(x, mask3, lp, num_heads):
    B, S, D = x.shape
    H = num_heads
    Dh = D // H

    x2d = x.reshape(B * S, D)
    qkv = linear_rows(x2d, lp["wqkv"], lp["bqkv"])           # (B*S, 3D) bf16
    # Single bf16 relayout pass (token-major -> head-major); the context-side
    # relayout is gone (epilogue consumes head-major ctx directly).
    qkv_t = jnp.transpose(qkv.reshape(B, S, 3, H, Dh), (0, 2, 3, 1, 4))  # (B,3,H,S,Dh)
    ctx = attention(qkv_t, mask3)                            # (B, H, S, Dh) bf16
    return post_block(ctx, x, lp, H)                         # (B, S, D) f32


def encoder_forward(tokens, padding_mask, prepared, num_heads):
    x = embed_and_pos_encode(tokens, prepared["embedding_scaled"], prepared["pe"])
    B, S = tokens.shape
    if padding_mask is None:
        padding_mask = jnp.ones((B, S), jnp.float32)
    mask3 = padding_mask.astype(jnp.float32).reshape(B, 1, S)
    for lp in prepared["layers"]:
        x = encoder_block(x, mask3, lp, num_heads)
    return x


# ----------------------------------------------------------------------------
# One-time parameter preparation (concat / fold scales / cast to bf16)
# ----------------------------------------------------------------------------
def prepare_params(params, d_model, num_heads):
    H = num_heads
    D = d_model
    Dh = D // H
    scale = 1.0 / math.sqrt(Dh)
    layers = []
    for lp in params["layers"]:
        wqkv = jnp.concatenate([lp["wq"] * scale, lp["wk"], lp["wv"]],
                               axis=1).astype(jnp.bfloat16)          # (D, 3D)
        bqkv = jnp.concatenate([lp["bq"] * scale, lp["bk"], lp["bv"]],
                               axis=1).astype(jnp.float32)           # (1, 3D)
        layers.append(dict(
            wqkv=wqkv, bqkv=bqkv,
            wo3=lp["wo"].reshape(H, Dh, D).astype(jnp.bfloat16), bo=lp["bo"],
            ln1_g=lp["ln1_g"], ln1_b=lp["ln1_b"],
            w1=lp["w1"].astype(jnp.bfloat16), bf1=lp["bf1"],
            w2=lp["w2"].astype(jnp.bfloat16), bf2=lp["bf2"],
            ln2_g=lp["ln2_g"], ln2_b=lp["ln2_b"]))
    return dict(embedding_scaled=params["embedding"] * math.sqrt(d_model),
                pe=params["pe"], layers=layers)


# ----------------------------------------------------------------------------
# Pure-JAX f32 reference (for correctness check only)
# ----------------------------------------------------------------------------
def _ref_layer_norm(v, g, b):
    mu = v.mean(-1, keepdims=True)
    var = ((v - mu) ** 2).mean(-1, keepdims=True)
    return (v - mu) / jnp.sqrt(var + 1e-5) * g + b


def encoder_forward_ref(tokens, padding_mask, params, d_model, num_heads):
    B, S = tokens.shape
    x = (jnp.take(params["embedding"], tokens, axis=0) * math.sqrt(d_model)
         + params["pe"][:S][None])
    D = x.shape[-1]
    H, Dh = num_heads, D // num_heads
    if padding_mask is None:
        padding_mask = jnp.ones((B, S), jnp.float32)
    for lp in params["layers"]:
        q = (x @ lp["wq"] + lp["bq"]).reshape(B, S, H, Dh)
        k = (x @ lp["wk"] + lp["bk"]).reshape(B, S, H, Dh)
        v = (x @ lp["wv"] + lp["bv"]).reshape(B, S, H, Dh)
        s = jnp.einsum("bqhd,bkhd->bhqk", q, k) / math.sqrt(Dh)
        s = s + ((1.0 - padding_mask) * -1e9)[:, None, None, :]
        p = jax.nn.softmax(s, axis=-1)
        attn = jnp.einsum("bhqk,bkhd->bqhd", p, v).reshape(B, S, D)
        attn = attn @ lp["wo"] + lp["bo"]
        h1 = _ref_layer_norm(x + attn, lp["ln1_g"], lp["ln1_b"])
        ff = jnp.maximum(h1 @ lp["w1"] + lp["bf1"], 0.0) @ lp["w2"] + lp["bf2"]
        x = _ref_layer_norm(h1 + ff, lp["ln2_g"], lp["ln2_b"])
    return x


# ----------------------------------------------------------------------------
# Deterministic parameter init (synthetic; matches __init__ shapes)
# ----------------------------------------------------------------------------
def init_params(key, vocab_size, d_model, num_heads, dff, num_layers, max_len):
    keys = jax.random.split(key, 1 + num_layers)
    emb = jax.random.normal(keys[0], (vocab_size, d_model), jnp.float32) * 0.02

    pos = jnp.arange(max_len, dtype=jnp.float32)[:, None]
    div = jnp.exp(jnp.arange(0, d_model, 2, dtype=jnp.float32)
                  * (-math.log(10000.0) / d_model))
    pe = jnp.zeros((max_len, d_model), jnp.float32)
    pe = pe.at[:, 0::2].set(jnp.sin(pos * div))
    pe = pe.at[:, 1::2].set(jnp.cos(pos * div))

    def lin(k, fin, fout):
        return jax.random.normal(k, (fin, fout), jnp.float32) / math.sqrt(fin)

    layers = []
    for i in range(num_layers):
        ks = jax.random.split(keys[1 + i], 6)
        layers.append(dict(
            wq=lin(ks[0], d_model, d_model), bq=jnp.zeros((1, d_model), jnp.float32),
            wk=lin(ks[1], d_model, d_model), bk=jnp.zeros((1, d_model), jnp.float32),
            wv=lin(ks[2], d_model, d_model), bv=jnp.zeros((1, d_model), jnp.float32),
            wo=lin(ks[3], d_model, d_model), bo=jnp.zeros((1, d_model), jnp.float32),
            ln1_g=jnp.ones((1, d_model), jnp.float32),
            ln1_b=jnp.zeros((1, d_model), jnp.float32),
            w1=lin(ks[4], d_model, dff), bf1=jnp.zeros((1, dff), jnp.float32),
            w2=lin(ks[5], dff, d_model), bf2=jnp.zeros((1, d_model), jnp.float32),
            ln2_g=jnp.ones((1, d_model), jnp.float32),
            ln2_b=jnp.zeros((1, d_model), jnp.float32),
        ))
    return dict(embedding=emb, pe=pe, layers=layers)


if __name__ == "__main__":
    vocab_size, d_model, num_heads, dff, num_layers, max_len = 50, 32, 4, 64, 2, 16
    B, S = 2, 8

    key = jax.random.PRNGKey(0)
    kp, kt = jax.random.split(key)
    params = init_params(kp, vocab_size, d_model, num_heads, dff, num_layers, max_len)
    prepared = prepare_params(params, d_model, num_heads)

    tokens = jax.random.randint(kt, (B, S), 0, vocab_size, dtype=jnp.int32)
    padding_mask = jnp.ones((B, S), jnp.float32).at[1, 6:].set(0.0)  # pad last 2 of row 1

    fwd = jax.jit(partial(encoder_forward, num_heads=num_heads))
    out = fwd(tokens, padding_mask, prepared)
    out = jax.block_until_ready(out)

    ref = encoder_forward_ref(tokens, padding_mask, params, d_model, num_heads)
    assert out.shape == (B, S, d_model)
    # bf16 MXU matmuls (f32 accumulation) -> slightly looser tolerance vs f32 ref
    assert jnp.allclose(out, ref, atol=1e-1, rtol=5e-2)

    print("KERNEL_OK")
</pallas_src>

<mosaic_0001>
module attributes {stable_mosaic.version = 11 : i64} {
  func.func @_embed_pe_kernel(%arg0: i32, %arg1: i32, %arg2: memref<1x8x32xf32, #tpu.memory_space<vmem>>, %arg3: memref<8x32xf32, #tpu.memory_space<vmem>>, %arg4: memref<1x8x32xf32, #tpu.memory_space<vmem>>) attributes {dimension_semantics = [#tpu.dimension_semantics<parallel>, #tpu.dimension_semantics<parallel>], iteration_bounds = array<i64: 2, 1>, scalar_prefetch = 0 : i64, scratch_operands = 0 : i64, tpu.core_type = #tpu.core_type<tc>, window_params = [{transform_indices = @transform_0, window_bounds = array<i64: 1, 8, 32>}, {transform_indices = @transform_1, window_bounds = array<i64: 8, 32>}, {transform_indices = @transform_2, window_bounds = array<i64: 1, 8, 32>}]} {
    %c0 = arith.constant 0 : index
    %c0_0 = arith.constant 0 : index
    %c0_1 = arith.constant 0 : index
    %0 = vector.load %arg2[%c0, %c0_0, %c0_1] : memref<1x8x32xf32, #tpu.memory_space<vmem>>, vector<1x8x32xf32>
    %1 = vector.shape_cast %0 : vector<1x8x32xf32> to vector<8x32xf32>
    %c0_2 = arith.constant 0 : index
    %c0_3 = arith.constant 0 : index
    %2 = vector.load %arg3[%c0_2, %c0_3] : memref<8x32xf32, #tpu.memory_space<vmem>>, vector<8x32xf32>
    %3 = arith.addf %1, %2 : vector<8x32xf32>
    %c0_4 = arith.constant 0 : index
    %c0_5 = arith.constant 0 : index
    %c0_6 = arith.constant 0 : index
    %4 = vector.load %arg4[%c0_4, %c0_5, %c0_6] : memref<1x8x32xf32, #tpu.memory_space<vmem>>, vector<1x8x32xf32>
    %5 = vector.shape_cast %4 : vector<1x8x32xf32> to vector<8x32xf32>
    %6 = vector.shape_cast %3 : vector<8x32xf32> to vector<1x8x32xf32>
    tpu.vector_store %arg4[%c0_4, %c0_5, %c0_6], %6 {strides = array<i32>} : memref<1x8x32xf32, #tpu.memory_space<vmem>>, vector<1x8x32xf32>,
    return
  }
  func.func @transform_0(%arg0: i32, %arg1: i32) -> (i32, i32, i32) {
    %c0_i32 = arith.constant 0 : i32
    %c0_i32_0 = arith.constant 0 : i32
    return %arg0, %arg1, %c0_i32 : i32, i32, i32
  }
  func.func @transform_1(%arg0: i32, %arg1: i32) -> (i32, i32) {
    %c0_i32 = arith.constant 0 : i32
    %c0_i32_0 = arith.constant 0 : i32
    return %arg1, %c0_i32 : i32, i32
  }
  func.func @transform_2(%arg0: i32, %arg1: i32) -> (i32, i32, i32) {
    %c0_i32 = arith.constant 0 : i32
    %c0_i32_0 = arith.constant 0 : i32
    return %arg0, %arg1, %c0_i32 : i32, i32, i32
  }
}

module attributes {stable_mosaic.version = 11 : i64} {
  func.func @_linear_kernel(%arg0: i32, %arg1: memref<16x32xf32, #tpu.memory_space<vmem>>, %arg2: memref<32x96xbf16, #tpu.memory_space<vmem>>, %arg3: memref<1x96xf32, #tpu.memory_space<vmem>>, %arg4: memref<16x96xbf16, #tpu.memory_space<vmem>>) attributes {dimension_semantics = [#tpu.dimension_semantics<parallel>], iteration_bounds = array<i64: 1>, scalar_prefetch = 0 : i64, scratch_operands = 0 : i64, tpu.core_type = #tpu.core_type<tc>, window_params = [{transform_indices = @transform_0, window_bounds = array<i64: 16, 32>}, {pipeline_mode = #tpu.pipeline_mode<synchronous>, transform_indices = @transform_1, window_bounds = array<i64: 32, 96>}, {pipeline_mode = #tpu.pipeline_mode<synchronous>, transform_indices = @transform_2, window_bounds = array<i64: 1, 96>}, {transform_indices = @transform_3, window_bounds = array<i64: 16, 96>}]} {
    %c0 = arith.constant 0 : index
    %c0_0 = arith.constant 0 : index
    %0 = vector.load %arg1[%c0, %c0_0] : memref<16x32xf32, #tpu.memory_space<vmem>>, vector<16x32xf32>
    %1 = arith.truncf %0 : vector<16x32xf32> to vector<16x32xbf16>
    %c0_1 = arith.constant 0 : index
    %c0_2 = arith.constant 0 : index
    %2 = vector.load %arg2[%c0_1, %c0_2] : memref<32x96xbf16, #tpu.memory_space<vmem>>, vector<32x96xbf16>
    %cst = arith.constant dense<0.000000e+00> : vector<16x96xf32>
    %3 = tpu.matmul %1, %2, %cst {dimension_numbers = #tpu.dot_dimension_numbers<[1], [0], [0], [1], [0, 0, 1, 1], [], []>} : vector<16x32xbf16>, vector<32x96xbf16>, vector<16x96xf32> -> vector<16x96xf32>
    %c0_3 = arith.constant 0 : index
    %c0_4 = arith.constant 0 : index
    %4 = vector.load %arg3[%c0_3, %c0_4] : memref<1x96xf32, #tpu.memory_space<vmem>>, vector<1x96xf32>
    %5 = vector.broadcast %4 : vector<1x96xf32> to vector<16x96xf32>
    %6 = arith.addf %3, %5 : vector<16x96xf32>
    %7 = arith.truncf %6 : vector<16x96xf32> to vector<16x96xbf16>
    %c0_5 = arith.constant 0 : index
    %c0_6 = arith.constant 0 : index
    %8 = vector.load %arg4[%c0_5, %c0_6] : memref<16x96xbf16, #tpu.memory_space<vmem>>, vector<16x96xbf16>
    tpu.vector_store %arg4[%c0_5, %c0_6], %7 {strides = array<i32>} : memref<16x96xbf16, #tpu.memory_space<vmem>>, vector<16x96xbf16>,
    return
  }
  func.func @transform_0(%arg0: i32) -> (i32, i32) {
    %c0_i32 = arith.constant 0 : i32
    %c0_i32_0 = arith.constant 0 : i32
    return %arg0, %c0_i32 : i32, i32
  }
  func.func @transform_1(%arg0: i32) -> (i32, i32) {
    %c0_i32 = arith.constant 0 : i32
    %c0_i32_0 = arith.constant 0 : i32
    %c0_i32_1 = arith.constant 0 : i32
    return %c0_i32, %c0_i32_0 : i32, i32
  }
  func.func @transform_2(%arg0: i32) -> (i32, i32) {
    %c0_i32 = arith.constant 0 : i32
    %c0_i32_0 = arith.constant 0 : i32
    %c0_i32_1 = arith.constant 0 : i32
    return %c0_i32, %c0_i32_0 : i32, i32
  }
  func.func @transform_3(%arg0: i32) -> (i32, i32) {
    %c0_i32 = arith.constant 0 : i32
    %c0_i32_0 = arith.constant 0 : i32
    return %arg0, %c0_i32 : i32, i32
  }
}

module attributes {stable_mosaic.version = 11 : i64} {
  func.func @_attn_single_kernel(%arg0: i32, %arg1: i32, %arg2: memref<1x1x4x8x8xbf16, #tpu.memory_space<vmem>>, %arg3: memref<1x1x4x8x8xbf16, #tpu.memory_space<vmem>>, %arg4: memref<1x1x4x8x8xbf16, #tpu.memory_space<vmem>>, %arg5: memref<1x1x8xf32, #tpu.memory_space<vmem>>, %arg6: memref<1x4x8x8xbf16, #tpu.memory_space<vmem>>) attributes {dimension_semantics = [#tpu.dimension_semantics<parallel>, #tpu.dimension_semantics<parallel>], iteration_bounds = array<i64: 2, 1>, scalar_prefetch = 0 : i64, scratch_operands = 0 : i64, tpu.core_type = #tpu.core_type<tc>, window_params = [{transform_indices = @transform_0, window_bounds = array<i64: 1, 1, 4, 8, 8>}, {transform_indices = @transform_1, window_bounds = array<i64: 1, 1, 4, 8, 8>}, {transform_indices = @transform_2, window_bounds = array<i64: 1, 1, 4, 8, 8>}, {transform_indices = @transform_3, window_bounds = array<i64: 1, 1, 8>}, {transform_indices = @transform_4, window_bounds = array<i64: 1, 4, 8, 8>}]} {
    %c0 = arith.constant 0 : index
    %c0_0 = arith.constant 0 : index
    %c0_1 = arith.constant 0 : index
    %c0_2 = arith.constant 0 : index
    %c0_3 = arith.constant 0 : index
    %0 = vector.load %arg2[%c0, %c0_0, %c0_1, %c0_2, %c0_3] : memref<1x1x4x8x8xbf16, #tpu.memory_space<vmem>>, vector<1x1x4x8x8xbf16>
    %1 = vector.shape_cast %0 : vector<1x1x4x8x8xbf16> to vector<4x8x8xbf16>
    %c0_4 = arith.constant 0 : index
    %c0_5 = arith.constant 0 : index
    %c0_6 = arith.constant 0 : index
    %c0_7 = arith.constant 0 : index
    %c0_8 = arith.constant 0 : index
    %2 = vector.load %arg3[%c0_4, %c0_5, %c0_6, %c0_7, %c0_8] : memref<1x1x4x8x8xbf16, #tpu.memory_space<vmem>>, vector<1x1x4x8x8xbf16>
    %3 = vector.shape_cast %2 : vector<1x1x4x8x8xbf16> to vector<4x8x8xbf16>
    %c0_9 = arith.constant 0 : index
    %c0_10 = arith.constant 0 : index
    %c0_11 = arith.constant 0 : index
    %c0_12 = arith.constant 0 : index
    %c0_13 = arith.constant 0 : index
    %4 = vector.load %arg4[%c0_9, %c0_10, %c0_11, %c0_12, %c0_13] : memref<1x1x4x8x8xbf16, #tpu.memory_space<vmem>>, vector<1x1x4x8x8xbf16>
    %5 = vector.shape_cast %4 : vector<1x1x4x8x8xbf16> to vector<4x8x8xbf16>
    %c0_14 = arith.constant 0 : index
    %c0_15 = arith.constant 0 : index
    %c0_16 = arith.constant 0 : index
    %6 = vector.load %arg5[%c0_14, %c0_15, %c0_16] : memref<1x1x8xf32, #tpu.memory_space<vmem>>, vector<1x1x8xf32>
    %7 = vector.shape_cast %6 : vector<1x1x8xf32> to vector<8xf32>
    %cst = arith.constant 1.000000e+00 : f32
    %8 = vector.broadcast %cst : f32 to vector<8xf32>
    %9 = arith.subf %8, %7 : vector<8xf32>
    %cst_17 = arith.constant -1.000000e+09 : f32
    %10 = vector.broadcast %cst_17 : f32 to vector<8xf32>
    %11 = arith.mulf %9, %10 : vector<8xf32>
    "tpu.trace_start"() <{level = 10 : i32, message = "hqd,hkd->hqk"}> : () -> ()
    %cst_18 = arith.constant dense<0.000000e+00> : vector<4x8x8xf32>
    %12 = tpu.matmul %1, %3, %cst_18 {dimension_numbers = #tpu.dot_dimension_numbers<[2], [2], [1], [1], [0, 0, 0, 1, 1, 1], [0], [0]>} : vector<4x8x8xbf16>, vector<4x8x8xbf16>, vector<4x8x8xf32> -> vector<4x8x8xf32>
    "tpu.trace_stop"() : () -> ()
    %13 = vector.shape_cast %11 : vector<8xf32> to vector<1x1x8xf32>
    %14 = vector.broadcast %13 : vector<1x1x8xf32> to vector<4x8x8xf32>
    %15 = arith.addf %12, %14 : vector<4x8x8xf32>
    %cst_19 = arith.constant dense<0xFF800000> : vector<4x8xf32>
    %16 = vector.multi_reduction <maximumf>, %15, %cst_19 [2] : vector<4x8x8xf32> to vector<4x8xf32>
    %17 = vector.shape_cast %16 : vector<4x8xf32> to vector<4x8x1xf32>
    %18 = vector.broadcast %17 : vector<4x8x1xf32> to vector<4x8x8xf32>
    %19 = arith.subf %15, %18 : vector<4x8x8xf32>
    %20 = math.exp %19 : vector<4x8x8xf32>
    %cst_20 = arith.constant dense<0.000000e+00> : vector<4x8xf32>
    %21 = vector.multi_reduction <add>, %20, %cst_20 [2] : vector<4x8x8xf32> to vector<4x8xf32>
    %22 = vector.shape_cast %21 : vector<4x8xf32> to vector<4x8x1xf32>
    %23 = arith.truncf %20 : vector<4x8x8xf32> to vector<4x8x8xbf16>
    "tpu.trace_start"() <{level = 10 : i32, message = "hqk,hkd->hqd"}> : () -> ()
    %cst_21 = arith.constant dense<0.000000e+00> : vector<4x8x8xf32>
    %24 = tpu.matmul %23, %5, %cst_21 {dimension_numbers = #tpu.dot_dimension_numbers<[2], [1], [1], [2], [0, 0, 0, 1, 1, 2], [0], [0]>} : vector<4x8x8xbf16>, vector<4x8x8xbf16>, vector<4x8x8xf32> -> vector<4x8x8xf32>
    "tpu.trace_stop"() : () -> ()
    %25 = tpu.reciprocal %22 {approx = true} : vector<4x8x1xf32> -> vector<4x8x1xf32>
    %26 = vector.broadcast %25 : vector<4x8x1xf32> to vector<4x8x8xf32>
    %27 = arith.mulf %24, %26 : vector<4x8x8xf32>
    %28 = arith.truncf %27 : vector<4x8x8xf32> to vector<4x8x8xbf16>
    %c0_22 = arith.constant 0 : index
    %c0_23 = arith.constant 0 : index
    %c0_24 = arith.constant 0 : index
    %c0_25 = arith.constant 0 : index
    %29 = vector.load %arg6[%c0_22, %c0_23, %c0_24, %c0_25] : memref<1x4x8x8xbf16, #tpu.memory_space<vmem>>, vector<1x4x8x8xbf16>
    %30 = vector.shape_cast %29 : vector<1x4x8x8xbf16> to vector<4x8x8xbf16>
    %31 = vector.shape_cast %28 : vector<4x8x8xbf16> to vector<1x4x8x8xbf16>
    tpu.vector_store %arg6[%c0_22, %c0_23, %c0_24, %c0_25], %31 {strides = array<i32>} : memref<1x4x8x8xbf16, #tpu.memory_space<vmem>>, vector<1x4x8x8xbf16>,
    return
  }
  func.func @transform_0(%arg0: i32, %arg1: i32) -> (i32, i32, i32, i32, i32) {
    %c0_i32 = arith.constant 0 : i32
    %c0_i32_0 = arith.constant 0 : i32
    %c0_i32_1 = arith.constant 0 : i32
    %c0_i32_2 = arith.constant 0 : i32
    return %arg0, %c0_i32, %c0_i32_0, %arg1, %c0_i32_1 : i32, i32, i32, i32, i32
  }
  func.func @transform_1(%arg0: i32, %arg1: i32) -> (i32, i32, i32, i32, i32) {
    %c1_i32 = arith.constant 1 : i32
    %c0_i32 = arith.constant 0 : i32
    %c0_i32_0 = arith.constant 0 : i32
    %c0_i32_1 = arith.constant 0 : i32
    %c0_i32_2 = arith.constant 0 : i32
    return %arg0, %c1_i32, %c0_i32, %c0_i32_0, %c0_i32_1 : i32, i32, i32, i32, i32
  }
  func.func @transform_2(%arg0: i32, %arg1: i32) -> (i32, i32, i32, i32, i32) {
    %c2_i32 = arith.constant 2 : i32
    %c0_i32 = arith.constant 0 : i32
    %c0_i32_0 = arith.constant 0 : i32
    %c0_i32_1 = arith.constant 0 : i32
    %c0_i32_2 = arith.constant 0 : i32
    return %arg0, %c2_i32, %c0_i32, %c0_i32_0, %c0_i32_1 : i32, i32, i32, i32, i32
  }
  func.func @transform_3(%arg0: i32, %arg1: i32) -> (i32, i32, i32) {
    %c0_i32 = arith.constant 0 : i32
    %c0_i32_0 = arith.constant 0 : i32
    %c0_i32_1 = arith.constant 0 : i32
    return %arg0, %c0_i32, %c0_i32_0 : i32, i32, i32
  }
  func.func @transform_4(%arg0: i32, %arg1: i32) -> (i32, i32, i32, i32) {
    %c0_i32 = arith.constant 0 : i32
    %c0_i32_0 = arith.constant 0 : i32
    %c0_i32_1 = arith.constant 0 : i32
    return %arg0, %c0_i32, %arg1, %c0_i32_0 : i32, i32, i32, i32
  }
}

module attributes {stable_mosaic.version = 11 : i64} {
  func.func @_post_block_kernel(%arg0: i32, %arg1: i32, %arg2: i32, %arg3: memref<1x4x8x8xbf16, #tpu.memory_space<vmem>>, %arg4: memref<1x8x32xf32, #tpu.memory_space<vmem>>, %arg5: memref<4x8x32xbf16, #tpu.memory_space<vmem>>, %arg6: memref<1x32xf32, #tpu.memory_space<vmem>>, %arg7: memref<1x32xf32, #tpu.memory_space<vmem>>, %arg8: memref<1x32xf32, #tpu.memory_space<vmem>>, %arg9: memref<32x64xbf16, #tpu.memory_space<vmem>>, %arg10: memref<1x64xf32, #tpu.memory_space<vmem>>, %arg11: memref<64x32xbf16, #tpu.memory_space<vmem>>, %arg12: memref<1x32xf32, #tpu.memory_space<vmem>>, %arg13: memref<1x32xf32, #tpu.memory_space<vmem>>, %arg14: memref<1x32xf32, #tpu.memory_space<vmem>>, %arg15: memref<1x8x32xf32, #tpu.memory_space<vmem>>, %arg16: memref<8x32xf32, #tpu.memory_space<vmem>>, %arg17: memref<8x32xf32, #tpu.memory_space<vmem>>) attributes {dimension_semantics = [#tpu.dimension_semantics<parallel>, #tpu.dimension_semantics<parallel>, #tpu.dimension_semantics<arbitrary>], iteration_bounds = array<i64: 2, 1, 1>, scalar_prefetch = 0 : i64, scratch_operands = 2 : i64, tpu.core_type = #tpu.core_type<tc>, window_params = [{transform_indices = @transform_0, window_bounds = array<i64: 1, 4, 8, 8>}, {transform_indices = @transform_1, window_bounds = array<i64: 1, 8, 32>}, {pipeline_mode = #tpu.pipeline_mode<synchronous>, transform_indices = @transform_2, window_bounds = array<i64: 4, 8, 32>}, {pipeline_mode = #tpu.pipeline_mode<synchronous>, transform_indices = @transform_3, window_bounds = array<i64: 1, 32>}, {pipeline_mode = #tpu.pipeline_mode<synchronous>, transform_indices = @transform_4, window_bounds = array<i64: 1, 32>}, {pipeline_mode = #tpu.pipeline_mode<synchronous>, transform_indices = @transform_5, window_bounds = array<i64: 1, 32>}, {transform_indices = @transform_6, window_bounds = array<i64: 32, 64>}, {transform_indices = @transform_7, window_bounds = array<i64: 1, 64>}, {transform_indices = @transform_8, window_bounds = array<i64: 64, 32>}, {pipeline_mode = #tpu.pipeline_mode<synchronous>, transform_indices = @transform_9, window_bounds = array<i64: 1, 32>}, {pipeline_mode = #tpu.pipeline_mode<synchronous>, transform_indices = @transform_10, window_bounds = array<i64: 1, 32>}, {pipeline_mode = #tpu.pipeline_mode<synchronous>, transform_indices = @transform_11, window_bounds = array<i64: 1, 32>}, {transform_indices = @transform_12, window_bounds = array<i64: 1, 8, 32>}]} {
    %c0_i32 = arith.constant 0 : i32
    %0 = arith.cmpi eq, %arg2, %c0_i32 : i32
    %1 = arith.extui %0 : i1 to i32
    %c0_i32_0 = arith.constant 0 : i32
    %2 = arith.cmpi ne, %1, %c0_i32_0 : i32
    scf.if %2 {
      %c0_16 = arith.constant 0 : index
      %c0_17 = arith.constant 0 : index
      %c0_18 = arith.constant 0 : index
      %c0_19 = arith.constant 0 : index
      %21 = vector.load %arg3[%c0_16, %c0_17, %c0_18, %c0_19] : memref<1x4x8x8xbf16, #tpu.memory_space<vmem>>, vector<1x1x8x8xbf16>
      %22 = vector.shape_cast %21 : vector<1x1x8x8xbf16> to vector<8x8xbf16>
      %c0_20 = arith.constant 0 : index
      %c0_21 = arith.constant 0 : index
      %c0_22 = arith.constant 0 : index
      %23 = vector.load %arg5[%c0_20, %c0_21, %c0_22] : memref<4x8x32xbf16, #tpu.memory_space<vmem>>, vector<1x8x32xbf16>
      %24 = vector.shape_cast %23 : vector<1x8x32xbf16> to vector<8x32xbf16>
      %cst_23 = arith.constant dense<0.000000e+00> : vector<8x32xf32>
      %25 = tpu.matmul %22, %24, %cst_23 {dimension_numbers = #tpu.dot_dimension_numbers<[1], [0], [0], [1], [0, 0, 1, 1], [], []>} : vector<8x8xbf16>, vector<8x32xbf16>, vector<8x32xf32> -> vector<8x32xf32>
      %c0_24 = arith.constant 0 : index
      %c1 = arith.constant 1 : index
      %c0_25 = arith.constant 0 : index
      %c0_26 = arith.constant 0 : index
      %26 = vector.load %arg3[%c0_24, %c1, %c0_25, %c0_26] : memref<1x4x8x8xbf16, #tpu.memory_space<vmem>>, vector<1x1x8x8xbf16>
      %27 = vector.shape_cast %26 : vector<1x1x8x8xbf16> to vector<8x8xbf16>
      %c1_27 = arith.constant 1 : index
      %c0_28 = arith.constant 0 : index
      %c0_29 = arith.constant 0 : index
      %28 = vector.load %arg5[%c1_27, %c0_28, %c0_29] : memref<4x8x32xbf16, #tpu.memory_space<vmem>>, vector<1x8x32xbf16>
      %29 = vector.shape_cast %28 : vector<1x8x32xbf16> to vector<8x32xbf16>
      %cst_30 = arith.constant dense<0.000000e+00> : vector<8x32xf32>
      %30 = tpu.matmul %27, %29, %cst_30 {dimension_numbers = #tpu.dot_dimension_numbers<[1], [0], [0], [1], [0, 0, 1, 1], [], []>} : vector<8x8xbf16>, vector<8x32xbf16>, vector<8x32xf32> -> vector<8x32xf32>
      %31 = arith.addf %25, %30 : vector<8x32xf32>
      %c0_31 = arith.constant 0 : index
      %c2 = arith.constant 2 : index
      %c0_32 = arith.constant 0 : index
      %c0_33 = arith.constant 0 : index
      %32 = vector.load %arg3[%c0_31, %c2, %c0_32, %c0_33] : memref<1x4x8x8xbf16, #tpu.memory_space<vmem>>, vector<1x1x8x8xbf16>
      %33 = vector.shape_cast %32 : vector<1x1x8x8xbf16> to vector<8x8xbf16>
      %c2_34 = arith.constant 2 : index
      %c0_35 = arith.constant 0 : index
      %c0_36 = arith.constant 0 : index
      %34 = vector.load %arg5[%c2_34, %c0_35, %c0_36] : memref<4x8x32xbf16, #tpu.memory_space<vmem>>, vector<1x8x32xbf16>
      %35 = vector.shape_cast %34 : vector<1x8x32xbf16> to vector<8x32xbf16>
      %cst_37 = arith.constant dense<0.000000e+00> : vector<8x32xf32>
      %36 = tpu.matmul %33, %35, %cst_37 {dimension_numbers = #tpu.dot_dimension_numbers<[1], [0], [0], [1], [0, 0, 1, 1], [], []>} : vector<8x8xbf16>, vector<8x32xbf16>, vector<8x32xf32> -> vector<8x32xf32>
      %37 = arith.addf %31, %36 : vector<8x32xf32>
      %c0_38 = arith.constant 0 : index
      %c3 = arith.constant 3 : index
      %c0_39 = arith.constant 0 : index
      %c0_40 = arith.constant 0 : index
      %38 = vector.load %arg3[%c0_38, %c3, %c0_39, %c0_40] : memref<1x4x8x8xbf16, #tpu.memory_space<vmem>>, vector<1x1x8x8xbf16>
      %39 = vector.shape_cast %38 : vector<1x1x8x8xbf16> to vector<8x8xbf16>
      %c3_41 = arith.constant 3 : index
      %c0_42 = arith.constant 0 : index
      %c0_43 = arith.constant 0 : index
      %40 = vector.load %arg5[%c3_41, %c0_42, %c0_43] : memref<4x8x32xbf16, #tpu.memory_space<vmem>>, vector<1x8x32xbf16>
      %41 = vector.shape_cast %40 : vector<1x8x32xbf16> to vector<8x32xbf16>
      %cst_44 = arith.constant dense<0.000000e+00> : vector<8x32xf32>
      %42 = tpu.matmul %39, %41, %cst_44 {dimension_numbers = #tpu.dot_dimension_numbers<[1], [0], [0], [1], [0, 0, 1, 1], [], []>} : vector<8x8xbf16>, vector<8x32xbf16>, vector<8x32xf32> -> vector<8x32xf32>
      %43 = arith.addf %37, %42 : vector<8x32xf32>
      %c0_45 = arith.constant 0 : index
      %c0_46 = arith.constant 0 : index
      %44 = vector.load %arg6[%c0_45, %c0_46] : memref<1x32xf32, #tpu.memory_space<vmem>>, vector<1x32xf32>
      %45 = vector.broadcast %44 : vector<1x32xf32> to vector<8x32xf32>
      %46 = arith.addf %43, %45 : vector<8x32xf32>
      %c0_47 = arith.constant 0 : index
      %c0_48 = arith.constant 0 : index
      %c0_49 = arith.constant 0 : index
      %47 = vector.load %arg4[%c0_47, %c0_48, %c0_49] : memref<1x8x32xf32, #tpu.memory_space<vmem>>, vector<1x8x32xf32>
      %48 = vector.shape_cast %47 : vector<1x8x32xf32> to vector<8x32xf32>
      %49 = arith.addf %48, %46 : vector<8x32xf32>
      %c0_50 = arith.constant 0 : index
      %c0_51 = arith.constant 0 : index
      %50 = vector.load %arg7[%c0_50, %c0_51] : memref<1x32xf32, #tpu.memory_space<vmem>>, vector<1x32xf32>
      %c0_52 = arith.constant 0 : index
      %c0_53 = arith.constant 0 : index
      %51 = vector.load %arg8[%c0_52, %c0_53] : memref<1x32xf32, #tpu.memory_space<vmem>>, vector<1x32xf32>
      %cst_54 = arith.constant dense<0.000000e+00> : vector<8xf32>
      %52 = vector.multi_reduction <add>, %49, %cst_54 [1] : vector<8x32xf32> to vector<8xf32>
      %53 = vector.shape_cast %52 : vector<8xf32> to vector<8x1xf32>
      %cst_55 = arith.constant 3.200000e+01 : f32
      %54 = vector.broadcast %cst_55 : f32 to vector<8x1xf32>
      %55 = arith.divf %53, %54 : vector<8x1xf32>
      %56 = vector.broadcast %55 : vector<8x1xf32> to vector<8x32xf32>
      %57 = arith.subf %49, %56 : vector<8x32xf32>
      %58 = arith.mulf %57, %57 : vector<8x32xf32>
      %cst_56 = arith.constant dense<0.000000e+00> : vector<8xf32>
      %59 = vector.multi_reduction <add>, %58, %cst_56 [1] : vector<8x32xf32> to vector<8xf32>
      %60 = vector.shape_cast %59 : vector<8xf32> to vector<8x1xf32>
      %cst_57 = arith.constant 3.200000e+01 : f32
      %61 = vector.broadcast %cst_57 : f32 to vector<8x1xf32>
      %62 = arith.divf %60, %61 : vector<8x1xf32>
      %63 = vector.broadcast %55 : vector<8x1xf32> to vector<8x32xf32>
      %64 = arith.subf %49, %63 : vector<8x32xf32>
      %cst_58 = arith.constant 9.99999974E-6 : f32
      %65 = vector.broadcast %cst_58 : f32 to vector<8x1xf32>
      %66 = arith.addf %62, %65 : vector<8x1xf32>
      %67 = math.rsqrt %66 : vector<8x1xf32>
      %68 = vector.broadcast %67 : vector<8x1xf32> to vector<8x32xf32>
      %69 = arith.mulf %64, %68 : vector<8x32xf32>
      %70 = vector.broadcast %50 : vector<1x32xf32> to vector<8x32xf32>
      %71 = arith.mulf %69, %70 : vector<8x32xf32>
      %72 = vector.broadcast %51 : vector<1x32xf32> to vector<8x32xf32>
      %73 = arith.addf %71, %72 : vector<8x32xf32>
      %c0_59 = arith.constant 0 : index
      %c0_60 = arith.constant 0 : index
      %74 = vector.load %arg16[%c0_59, %c0_60] : memref<8x32xf32, #tpu.memory_space<vmem>>, vector<8x32xf32>
      tpu.vector_store %arg16[%c0_59, %c0_60], %73 {strides = array<i32>} : memref<8x32xf32, #tpu.memory_space<vmem>>, vector<8x32xf32>,
      %cst_61 = arith.constant 0.000000e+00 : f32
      %75 = vector.broadcast %cst_61 : f32 to vector<8x32xf32>
      %c0_62 = arith.constant 0 : index
      %c0_63 = arith.constant 0 : index
      %76 = vector.load %arg17[%c0_62, %c0_63] : memref<8x32xf32, #tpu.memory_space<vmem>>, vector<8x32xf32>
      tpu.vector_store %arg17[%c0_62, %c0_63], %75 {strides = array<i32>} : memref<8x32xf32, #tpu.memory_space<vmem>>, vector<8x32xf32>,
    } else {
    }
    %c0 = arith.constant 0 : index
    %c0_1 = arith.constant 0 : index
    %3 = vector.load %arg16[%c0, %c0_1] : memref<8x32xf32, #tpu.memory_space<vmem>>, vector<8x32xf32>
    %4 = arith.truncf %3 : vector<8x32xf32> to vector<8x32xbf16>
    %c0_2 = arith.constant 0 : index
    %c0_3 = arith.constant 0 : index
    %5 = vector.load %arg9[%c0_2, %c0_3] : memref<32x64xbf16, #tpu.memory_space<vmem>>, vector<32x64xbf16>
    %cst = arith.constant dense<0.000000e+00> : vector<8x64xf32>
    %6 = tpu.matmul %4, %5, %cst {dimension_numbers = #tpu.dot_dimension_numbers<[1], [0], [0], [1], [0, 0, 1, 1], [], []>} : vector<8x32xbf16>, vector<32x64xbf16>, vector<8x64xf32> -> vector<8x64xf32>
    %c0_4 = arith.constant 0 : index
    %c0_5 = arith.constant 0 : index
    %7 = vector.load %arg10[%c0_4, %c0_5] : memref<1x64xf32, #tpu.memory_space<vmem>>, vector<1x64xf32>
    %8 = vector.broadcast %7 : vector<1x64xf32> to vector<8x64xf32>
    %9 = arith.addf %6, %8 : vector<8x64xf32>
    %cst_6 = arith.constant 0.000000e+00 : f32
    %10 = vector.broadcast %cst_6 : f32 to vector<8x64xf32>
    %11 = arith.maximumf %9, %10 : vector<8x64xf32>
    %c0_7 = arith.constant 0 : index
    %c0_8 = arith.constant 0 : index
    %12 = vector.load %arg17[%c0_7, %c0_8] : memref<8x32xf32, #tpu.memory_space<vmem>>, vector<8x32xf32>
    %13 = arith.truncf %11 : vector<8x64xf32> to vector<8x64xbf16>
    %c0_9 = arith.constant 0 : index
    %c0_10 = arith.constant 0 : index
    %14 = vector.load %arg11[%c0_9, %c0_10] : memref<64x32xbf16, #tpu.memory_space<vmem>>, vector<64x32xbf16>
    %cst_11 = arith.constant dense<0.000000e+00> : vector<8x32xf32>
    %15 = tpu.matmul %13, %14, %cst_11 {dimension_numbers = #tpu.dot_dimension_numbers<[1], [0], [0], [1], [0, 0, 1, 1], [], []>} : vector<8x64xbf16>, vector<64x32xbf16>, vector<8x32xf32> -> vector<8x32xf32>
    %16 = arith.addf %12, %15 : vector<8x32xf32>
    %c0_12 = arith.constant 0 : index
    %c0_13 = arith.constant 0 : index
    %17 = vector.load %arg17[%c0_12, %c0_13] : memref<8x32xf32, #tpu.memory_space<vmem>>, vector<8x32xf32>
    tpu.vector_store %arg17[%c0_12, %c0_13], %16 {strides = array<i32>} : memref<8x32xf32, #tpu.memory_space<vmem>>, vector<8x32xf32>,
    %c0_i32_14 = arith.constant 0 : i32
    %18 = arith.cmpi eq, %arg2, %c0_i32_14 : i32
    %19 = arith.extui %18 : i1 to i32
    %c0_i32_15 = arith.constant 0 : i32
    %20 = arith.cmpi ne, %19, %c0_i32_15 : i32
    scf.if %20 {
      %c0_16 = arith.constant 0 : index
      %c0_17 = arith.constant 0 : index
      %21 = vector.load %arg16[%c0_16, %c0_17] : memref<8x32xf32, #tpu.memory_space<vmem>>, vector<8x32xf32>
      %c0_18 = arith.constant 0 : index
      %c0_19 = arith.constant 0 : index
      %22 = vector.load %arg17[%c0_18, %c0_19] : memref<8x32xf32, #tpu.memory_space<vmem>>, vector<8x32xf32>
      %23 = arith.addf %21, %22 : vector<8x32xf32>
      %c0_20 = arith.constant 0 : index
      %c0_21 = arith.constant 0 : index
      %24 = vector.load %arg12[%c0_20, %c0_21] : memref<1x32xf32, #tpu.memory_space<vmem>>, vector<1x32xf32>
      %25 = vector.broadcast %24 : vector<1x32xf32> to vector<8x32xf32>
      %26 = arith.addf %23, %25 : vector<8x32xf32>
      %c0_22 = arith.constant 0 : index
      %c0_23 = arith.constant 0 : index
      %27 = vector.load %arg13[%c0_22, %c0_23] : memref<1x32xf32, #tpu.memory_space<vmem>>, vector<1x32xf32>
      %c0_24 = arith.constant 0 : index
      %c0_25 = arith.constant 0 : index
      %28 = vector.load %arg14[%c0_24, %c0_25] : memref<1x32xf32, #tpu.memory_space<vmem>>, vector<1x32xf32>
      %cst_26 = arith.constant dense<0.000000e+00> : vector<8xf32>
      %29 = vector.multi_reduction <add>, %26, %cst_26 [1] : vector<8x32xf32> to vector<8xf32>
      %30 = vector.shape_cast %29 : vector<8xf32> to vector<8x1xf32>
      %cst_27 = arith.constant 3.200000e+01 : f32
      %31 = vector.broadcast %cst_27 : f32 to vector<8x1xf32>
      %32 = arith.divf %30, %31 : vector<8x1xf32>
      %33 = vector.broadcast %32 : vector<8x1xf32> to vector<8x32xf32>
      %34 = arith.subf %26, %33 : vector<8x32xf32>
      %35 = arith.mulf %34, %34 : vector<8x32xf32>
      %cst_28 = arith.constant dense<0.000000e+00> : vector<8xf32>
      %36 = vector.multi_reduction <add>, %35, %cst_28 [1] : vector<8x32xf32> to vector<8xf32>
      %37 = vector.shape_cast %36 : vector<8xf32> to vector<8x1xf32>
      %cst_29 = arith.constant 3.200000e+01 : f32
      %38 = vector.broadcast %cst_29 : f32 to vector<8x1xf32>
      %39 = arith.divf %37, %38 : vector<8x1xf32>
      %40 = vector.broadcast %32 : vector<8x1xf32> to vector<8x32xf32>
      %41 = arith.subf %26, %40 : vector<8x32xf32>
      %cst_30 = arith.constant 9.99999974E-6 : f32
      %42 = vector.broadcast %cst_30 : f32 to vector<8x1xf32>
      %43 = arith.addf %39, %42 : vector<8x1xf32>
      %44 = math.rsqrt %43 : vector<8x1xf32>
      %45 = vector.broadcast %44 : vector<8x1xf32> to vector<8x32xf32>
      %46 = arith.mulf %41, %45 : vector<8x32xf32>
      %47 = vector.broadcast %27 : vector<1x32xf32> to vector<8x32xf32>
      %48 = arith.mulf %46, %47 : vector<8x32xf32>
      %49 = vector.broadcast %28 : vector<1x32xf32> to vector<8x32xf32>
      %50 = arith.addf %48, %49 : vector<8x32xf32>
      %c0_31 = arith.constant 0 : index
      %c0_32 = arith.constant 0 : index
      %c0_33 = arith.constant 0 : index
      %51 = vector.load %arg15[%c0_31, %c0_32, %c0_33] : memref<1x8x32xf32, #tpu.memory_space<vmem>>, vector<1x8x32xf32>
      %52 = vector.shape_cast %51 : vector<1x8x32xf32> to vector<8x32xf32>
      %53 = vector.shape_cast %50 : vector<8x32xf32> to vector<1x8x32xf32>
      tpu.vector_store %arg15[%c0_31, %c0_32, %c0_33], %53 {strides = array<i32>} : memref<1x8x32xf32, #tpu.memory_space<vmem>>, vector<1x8x32xf32>,
    } else {
    }
    return
  }
  func.func @transform_0(%arg0: i32, %arg1: i32, %arg2: i32) -> (i32, i32, i32, i32) {
    %c0_i32 = arith.constant 0 : i32
    %c0_i32_0 = arith.constant 0 : i32
    %c0_i32_1 = arith.constant 0 : i32
    return %arg0, %c0_i32, %arg1, %c0_i32_0 : i32, i32, i32, i32
  }
  func.func @transform_1(%arg0: i32, %arg1: i32, %arg2: i32) -> (i32, i32, i32) {
    %c0_i32 = arith.constant 0 : i32
    %c0_i32_0 = arith.constant 0 : i32
    return %arg0, %arg1, %c0_i32 : i32, i32, i32
  }
  func.func @transform_2(%arg0: i32, %arg1: i32, %arg2: i32) -> (i32, i32, i32) {
    %c0_i32 = arith.constant 0 : i32
    %c0_i32_0 = arith.constant 0 : i32
    %c0_i32_1 = arith.constant 0 : i32
    %c0_i32_2 = arith.constant 0 : i32
    return %c0_i32, %c0_i32_0, %c0_i32_1 : i32, i32, i32
  }
  func.func @transform_3(%arg0: i32, %arg1: i32, %arg2: i32) -> (i32, i32) {
    %c0_i32 = arith.constant 0 : i32
    %c0_i32_0 = arith.constant 0 : i32
    %c0_i32_1 = arith.constant 0 : i32
    return %c0_i32, %c0_i32_0 : i32, i32
  }
  func.func @transform_4(%arg0: i32, %arg1: i32, %arg2: i32) -> (i32, i32) {
    %c0_i32 = arith.constant 0 : i32
    %c0_i32_0 = arith.constant 0 : i32
    %c0_i32_1 = arith.constant 0 : i32
    return %c0_i32, %c0_i32_0 : i32, i32
  }
  func.func @transform_5(%arg0: i32, %arg1: i32, %arg2: i32) -> (i32, i32) {
    %c0_i32 = arith.constant 0 : i32
    %c0_i32_0 = arith.constant 0 : i32
    %c0_i32_1 = arith.constant 0 : i32
    return %c0_i32, %c0_i32_0 : i32, i32
  }
  func.func @transform_6(%arg0: i32, %arg1: i32, %arg2: i32) -> (i32, i32) {
    %c0_i32 = arith.constant 0 : i32
    %c0_i32_0 = arith.constant 0 : i32
    return %c0_i32, %arg2 : i32, i32
  }
  func.func @transform_7(%arg0: i32, %arg1: i32, %arg2: i32) -> (i32, i32) {
    %c0_i32 = arith.constant 0 : i32
    %c0_i32_0 = arith.constant 0 : i32
    return %c0_i32, %arg2 : i32, i32
  }
  func.func @transform_8(%arg0: i32, %arg1: i32, %arg2: i32) -> (i32, i32) {
    %c0_i32 = arith.constant 0 : i32
    %c0_i32_0 = arith.constant 0 : i32
    return %arg2, %c0_i32 : i32, i32
  }
  func.func @transform_9(%arg0: i32, %arg1: i32, %arg2: i32) -> (i32, i32) {
    %c0_i32 = arith.constant 0 : i32
    %c0_i32_0 = arith.constant 0 : i32
    %c0_i32_1 = arith.constant 0 : i32
    return %c0_i32, %c0_i32_0 : i32, i32
  }
  func.func @transform_10(%arg0: i32, %arg1: i32, %arg2: i32) -> (i32, i32) {
    %c0_i32 = arith.constant 0 : i32
    %c0_i32_0 = arith.constant 0 : i32
    %c0_i32_1 = arith.constant 0 : i32
    return %c0_i32, %c0_i32_0 : i32, i32
  }
  func.func @transform_11(%arg0: i32, %arg1: i32, %arg2: i32) -> (i32, i32) {
    %c0_i32 = arith.constant 0 : i32
    %c0_i32_0 = arith.constant 0 : i32
    %c0_i32_1 = arith.constant 0 : i32
    return %c0_i32, %c0_i32_0 : i32, i32
  }
  func.func @transform_12(%arg0: i32, %arg1: i32, %arg2: i32) -> (i32, i32, i32) {
    %c0_i32 = arith.constant 0 : i32
    %c0_i32_0 = arith.constant 0 : i32
    return %arg0, %arg1, %c0_i32 : i32, i32, i32
  }
}

module attributes {stable_mosaic.version = 11 : i64} {
  func.func @_post_block_kernel(%arg0: i32, %arg1: i32, %arg2: i32, %arg3: memref<1x4x8x8xbf16, #tpu.memory_space<vmem>>, %arg4: memref<1x8x32xf32, #tpu.memory_space<vmem>>, %arg5: memref<4x8x32xbf16, #tpu.memory_space<vmem>>, %arg6: memref<1x32xf32, #tpu.memory_space<vmem>>, %arg7: memref<1x32xf32, #tpu.memory_space<vmem>>, %arg8: memref<1x32xf32, #tpu.memory_space<vmem>>, %arg9: memref<32x64xbf16, #tpu.memory_space<vmem>>, %arg10: memref<1x64xf32, #tpu.memory_space<vmem>>, %arg11: memref<64x32xbf16, #tpu.memory_space<vmem>>, %arg12: memref<1x32xf32, #tpu.memory_space<vmem>>, %arg13: memref<1x32xf32, #tpu.memory_space<vmem>>, %arg14: memref<1x32xf32, #tpu.memory_space<vmem>>, %arg15: memref<1x8x32xf32, #tpu.memory_space<vmem>>, %arg16: memref<8x32xf32, #tpu.memory_space<vmem>>, %arg17: memref<8x32xf32, #tpu.memory_space<vmem>>) attributes {dimension_semantics = [#tpu.dimension_semantics<parallel>, #tpu.dimension_semantics<parallel>, #tpu.dimension_semantics<arbitrary>], iteration_bounds = array<i64: 2, 1, 1>, scalar_prefetch = 0 : i64, scratch_operands = 2 : i64, tpu.core_type = #tpu.core_type<tc>, window_params = [{transform_indices = @transform_0, window_bounds = array<i64: 1, 4, 8, 8>}, {transform_indices = @transform_1, window_bounds = array<i64: 1, 8, 32>}, {pipeline_mode = #tpu.pipeline_mode<synchronous>, transform_indices = @transform_2, window_bounds = array<i64: 4, 8, 32>}, {pipeline_mode = #tpu.pipeline_mode<synchronous>, transform_indices = @transform_3, window_bounds = array<i64: 1, 32>}, {pipeline_mode = #tpu.pipeline_mode<synchronous>, transform_indices = @transform_4, window_bounds = array<i64: 1, 32>}, {pipeline_mode = #tpu.pipeline_mode<synchronous>, transform_indices = @transform_5, window_bounds = array<i64: 1, 32>}, {transform_indices = @transform_6, window_bounds = array<i64: 32, 64>}, {transform_indices = @transform_7, window_bounds = array<i64: 1, 64>}, {transform_indices = @transform_8, window_bounds = array<i64: 64, 32>}, {pipeline_mode = #tpu.pipeline_mode<synchronous>, transform_indices = @transform_9, window_bounds = array<i64: 1, 32>}, {pipeline_mode = #tpu.pipeline_mode<synchronous>, transform_indices = @transform_10, window_bounds = array<i64: 1, 32>}, {pipeline_mode = #tpu.pipeline_mode<synchronous>, transform_indices = @transform_11, window_bounds = array<i64: 1, 32>}, {transform_indices = @transform_12, window_bounds = array<i64: 1, 8, 32>}]} {
    %c0_i32 = arith.constant 0 : i32
    %0 = arith.cmpi eq, %arg2, %c0_i32 : i32
    %1 = arith.extui %0 : i1 to i32
    %c0_i32_0 = arith.constant 0 : i32
    %2 = arith.cmpi ne, %1, %c0_i32_0 : i32
    scf.if %2 {
      %c0_16 = arith.constant 0 : index
      %c0_17 = arith.constant 0 : index
      %c0_18 = arith.constant 0 : index
      %c0_19 = arith.constant 0 : index
      %21 = vector.load %arg3[%c0_16, %c0_17, %c0_18, %c0_19] : memref<1x4x8x8xbf16, #tpu.memory_space<vmem>>, vector<1x1x8x8xbf16>
      %22 = vector.shape_cast %21 : vector<1x1x8x8xbf16> to vector<8x8xbf16>
      %c0_20 = arith.constant 0 : index
      %c0_21 = arith.constant 0 : index
      %c0_22 = arith.constant 0 : index
      %23 = vector.load %arg5[%c0_20, %c0_21, %c0_22] : memref<4x8x32xbf16, #tpu.memory_space<vmem>>, vector<1x8x32xbf16>
      %24 = vector.shape_cast %23 : vector<1x8x32xbf16> to vector<8x32xbf16>
      %cst_23 = arith.constant dense<0.000000e+00> : vector<8x32xf32>
      %25 = tpu.matmul %22, %24, %cst_23 {dimension_numbers = #tpu.dot_dimension_numbers<[1], [0], [0], [1], [0, 0, 1, 1], [], []>} : vector<8x8xbf16>, vector<8x32xbf16>, vector<8x32xf32> -> vector<8x32xf32>
      %c0_24 = arith.constant 0 : index
      %c1 = arith.constant 1 : index
      %c0_25 = arith.constant 0 : index
      %c0_26 = arith.constant 0 : index
      %26 = vector.load %arg3[%c0_24, %c1, %c0_25, %c0_26] : memref<1x4x8x8xbf16, #tpu.memory_space<vmem>>, vector<1x1x8x8xbf16>
      %27 = vector.shape_cast %26 : vector<1x1x8x8xbf16> to vector<8x8xbf16>
      %c1_27 = arith.constant 1 : index
      %c0_28 = arith.constant 0 : index
      %c0_29 = arith.constant 0 : index
      %28 = vector.load %arg5[%c1_27, %c0_28, %c0_29] : memref<4x8x32xbf16, #tpu.memory_space<vmem>>, vector<1x8x32xbf16>
      %29 = vector.shape_cast %28 : vector<1x8x32xbf16> to vector<8x32xbf16>
      %cst_30 = arith.constant dense<0.000000e+00> : vector<8x32xf32>
      %30 = tpu.matmul %27, %29, %cst_30 {dimension_numbers = #tpu.dot_dimension_numbers<[1], [0], [0], [1], [0, 0, 1, 1], [], []>} : vector<8x8xbf16>, vector<8x32xbf16>, vector<8x32xf32> -> vector<8x32xf32>
      %31 = arith.addf %25, %30 : vector<8x32xf32>
      %c0_31 = arith.constant 0 : index
      %c2 = arith.constant 2 : index
      %c0_32 = arith.constant 0 : index
      %c0_33 = arith.constant 0 : index
      %32 = vector.load %arg3[%c0_31, %c2, %c0_32, %c0_33] : memref<1x4x8x8xbf16, #tpu.memory_space<vmem>>, vector<1x1x8x8xbf16>
      %33 = vector.shape_cast %32 : vector<1x1x8x8xbf16> to vector<8x8xbf16>
      %c2_34 = arith.constant 2 : index
      %c0_35 = arith.constant 0 : index
      %c0_36 = arith.constant 0 : index
      %34 = vector.load %arg5[%c2_34, %c0_35, %c0_36] : memref<4x8x32xbf16, #tpu.memory_space<vmem>>, vector<1x8x32xbf16>
      %35 = vector.shape_cast %34 : vector<1x8x32xbf16> to vector<8x32xbf16>
      %cst_37 = arith.constant dense<0.000000e+00> : vector<8x32xf32>
      %36 = tpu.matmul %33, %35, %cst_37 {dimension_numbers = #tpu.dot_dimension_numbers<[1], [0], [0], [1], [0, 0, 1, 1], [], []>} : vector<8x8xbf16>, vector<8x32xbf16>, vector<8x32xf32> -> vector<8x32xf32>
      %37 = arith.addf %31, %36 : vector<8x32xf32>
      %c0_38 = arith.constant 0 : index
      %c3 = arith.constant 3 : index
      %c0_39 = arith.constant 0 : index
      %c0_40 = arith.constant 0 : index
      %38 = vector.load %arg3[%c0_38, %c3, %c0_39, %c0_40] : memref<1x4x8x8xbf16, #tpu.memory_space<vmem>>, vector<1x1x8x8xbf16>
      %39 = vector.shape_cast %38 : vector<1x1x8x8xbf16> to vector<8x8xbf16>
      %c3_41 = arith.constant 3 : index
      %c0_42 = arith.constant 0 : index
      %c0_43 = arith.constant 0 : index
      %40 = vector.load %arg5[%c3_41, %c0_42, %c0_43] : memref<4x8x32xbf16, #tpu.memory_space<vmem>>, vector<1x8x32xbf16>
      %41 = vector.shape_cast %40 : vector<1x8x32xbf16> to vector<8x32xbf16>
      %cst_44 = arith.constant dense<0.000000e+00> : vector<8x32xf32>
      %42 = tpu.matmul %39, %41, %cst_44 {dimension_numbers = #tpu.dot_dimension_numbers<[1], [0], [0], [1], [0, 0, 1, 1], [], []>} : vector<8x8xbf16>, vector<8x32xbf16>, vector<8x32xf32> -> vector<8x32xf32>
      %43 = arith.addf %37, %42 : vector<8x32xf32>
      %c0_45 = arith.constant 0 : index
      %c0_46 = arith.constant 0 : index
      %44 = vector.load %arg6[%c0_45, %c0_46] : memref<1x32xf32, #tpu.memory_space<vmem>>, vector<1x32xf32>
      %45 = vector.broadcast %44 : vector<1x32xf32> to vector<8x32xf32>
      %46 = arith.addf %43, %45 : vector<8x32xf32>
      %c0_47 = arith.constant 0 : index
      %c0_48 = arith.constant 0 : index
      %c0_49 = arith.constant 0 : index
      %47 = vector.load %arg4[%c0_47, %c0_48, %c0_49] : memref<1x8x32xf32, #tpu.memory_space<vmem>>, vector<1x8x32xf32>
      %48 = vector.shape_cast %47 : vector<1x8x32xf32> to vector<8x32xf32>
      %49 = arith.addf %48, %46 : vector<8x32xf32>
      %c0_50 = arith.constant 0 : index
      %c0_51 = arith.constant 0 : index
      %50 = vector.load %arg7[%c0_50, %c0_51] : memref<1x32xf32, #tpu.memory_space<vmem>>, vector<1x32xf32>
      %c0_52 = arith.constant 0 : index
      %c0_53 = arith.constant 0 : index
      %51 = vector.load %arg8[%c0_52, %c0_53] : memref<1x32xf32, #tpu.memory_space<vmem>>, vector<1x32xf32>
      %cst_54 = arith.constant dense<0.000000e+00> : vector<8xf32>
      %52 = vector.multi_reduction <add>, %49, %cst_54 [1] : vector<8x32xf32> to vector<8xf32>
      %53 = vector.shape_cast %52 : vector<8xf32> to vector<8x1xf32>
      %cst_55 = arith.constant 3.200000e+01 : f32
      %54 = vector.broadcast %cst_55 : f32 to vector<8x1xf32>
      %55 = arith.divf %53, %54 : vector<8x1xf32>
      %56 = vector.broadcast %55 : vector<8x1xf32> to vector<8x32xf32>
      %57 = arith.subf %49, %56 : vector<8x32xf32>
      %58 = arith.mulf %57, %57 : vector<8x32xf32>
      %cst_56 = arith.constant dense<0.000000e+00> : vector<8xf32>
      %59 = vector.multi_reduction <add>, %58, %cst_56 [1] : vector<8x32xf32> to vector<8xf32>
      %60 = vector.shape_cast %59 : vector<8xf32> to vector<8x1xf32>
      %cst_57 = arith.constant 3.200000e+01 : f32
      %61 = vector.broadcast %cst_57 : f32 to vector<8x1xf32>
      %62 = arith.divf %60, %61 : vector<8x1xf32>
      %63 = vector.broadcast %55 : vector<8x1xf32> to vector<8x32xf32>
      %64 = arith.subf %49, %63 : vector<8x32xf32>
      %cst_58 = arith.constant 9.99999974E-6 : f32
      %65 = vector.broadcast %cst_58 : f32 to vector<8x1xf32>
      %66 = arith.addf %62, %65 : vector<8x1xf32>
      %67 = math.rsqrt %66 : vector<8x1xf32>
      %68 = vector.broadcast %67 : vector<8x1xf32> to vector<8x32xf32>
      %69 = arith.mulf %64, %68 : vector<8x32xf32>
      %70 = vector.broadcast %50 : vector<1x32xf32> to vector<8x32xf32>
      %71 = arith.mulf %69, %70 : vector<8x32xf32>
      %72 = vector.broadcast %51 : vector<1x32xf32> to vector<8x32xf32>
      %73 = arith.addf %71, %72 : vector<8x32xf32>
      %c0_59 = arith.constant 0 : index
      %c0_60 = arith.constant 0 : index
      %74 = vector.load %arg16[%c0_59, %c0_60] : memref<8x32xf32, #tpu.memory_space<vmem>>, vector<8x32xf32>
      tpu.vector_store %arg16[%c0_59, %c0_60], %73 {strides = array<i32>} : memref<8x32xf32, #tpu.memory_space<vmem>>, vector<8x32xf32>,
      %cst_61 = arith.constant 0.000000e+00 : f32
      %75 = vector.broadcast %cst_61 : f32 to vector<8x32xf32>
      %c0_62 = arith.constant 0 : index
      %c0_63 = arith.constant 0 : index
      %76 = vector.load %arg17[%c0_62, %c0_63] : memref<8x32xf32, #tpu.memory_space<vmem>>, vector<8x32xf32>
      tpu.vector_store %arg17[%c0_62, %c0_63], %75 {strides = array<i32>} : memref<8x32xf32, #tpu.memory_space<vmem>>, vector<8x32xf32>,
    } else {
    }
    %c0 = arith.constant 0 : index
    %c0_1 = arith.constant 0 : index
    %3 = vector.load %arg16[%c0, %c0_1] : memref<8x32xf32, #tpu.memory_space<vmem>>, vector<8x32xf32>
    %4 = arith.truncf %3 : vector<8x32xf32> to vector<8x32xbf16>
    %c0_2 = arith.constant 0 : index
    %c0_3 = arith.constant 0 : index
    %5 = vector.load %arg9[%c0_2, %c0_3] : memref<32x64xbf16, #tpu.memory_space<vmem>>, vector<32x64xbf16>
    %cst = arith.constant dense<0.000000e+00> : vector<8x64xf32>
    %6 = tpu.matmul %4, %5, %cst {dimension_numbers = #tpu.dot_dimension_numbers<[1], [0], [0], [1], [0, 0, 1, 1], [], []>} : vector<8x32xbf16>, vector<32x64xbf16>, vector<8x64xf32> -> vector<8x64xf32>
    %c0_4 = arith.constant 0 : index
    %c0_5 = arith.constant 0 : index
    %7 = vector.load %arg10[%c0_4, %c0_5] : memref<1x64xf32, #tpu.memory_space<vmem>>, vector<1x64xf32>
    %8 = vector.broadcast %7 : vector<1x64xf32> to vector<8x64xf32>
    %9 = arith.addf %6, %8 : vector<8x64xf32>
    %cst_6 = arith.constant 0.000000e+00 : f32
    %10 = vector.broadcast %cst_6 : f32 to vector<8x64xf32>
    %11 = arith.maximumf %9, %10 : vector<8x64xf32>
    %c0_7 = arith.constant 0 : index
    %c0_8 = arith.constant 0 : index
    %12 = vector.load %arg17[%c0_7, %c0_8] : memref<8x32xf32, #tpu.memory_space<vmem>>, vector<8x32xf32>
    %13 = arith.truncf %11 : vector<8x64xf32> to vector<8x64xbf16>
    %c0_9 = arith.constant 0 : index
    %c0_10 = arith.constant 0 : index
    %14 = vector.load %arg11[%c0_9, %c0_10] : memref<64x32xbf16, #tpu.memory_space<vmem>>, vector<64x32xbf16>
    %cst_11 = arith.constant dense<0.000000e+00> : vector<8x32xf32>
    %15 = tpu.matmul %13, %14, %cst_11 {dimension_numbers = #tpu.dot_dimension_numbers<[1], [0], [0], [1], [0, 0, 1, 1], [], []>} : vector<8x64xbf16>, vector<64x32xbf16>, vector<8x32xf32> -> vector<8x32xf32>
    %16 = arith.addf %12, %15 : vector<8x32xf32>
    %c0_12 = arith.constant 0 : index
    %c0_13 = arith.constant 0 : index
    %17 = vector.load %arg17[%c0_12, %c0_13] : memref<8x32xf32, #tpu.memory_space<vmem>>, vector<8x32xf32>
    tpu.vector_store %arg17[%c0_12, %c0_13], %16 {strides = array<i32>} : memref<8x32xf32, #tpu.memory_space<vmem>>, vector<8x32xf32>,
    %c0_i32_14 = arith.constant 0 : i32
    %18 = arith.cmpi eq, %arg2, %c0_i32_14 : i32
    %19 = arith.extui %18 : i1 to i32
    %c0_i32_15 = arith.constant 0 : i32
    %20 = arith.cmpi ne, %19, %c0_i32_15 : i32
    scf.if %20 {
      %c0_16 = arith.constant 0 : index
      %c0_17 = arith.constant 0 : index
      %21 = vector.load %arg16[%c0_16, %c0_17] : memref<8x32xf32, #tpu.memory_space<vmem>>, vector<8x32xf32>
      %c0_18 = arith.constant 0 : index
      %c0_19 = arith.constant 0 : index
      %22 = vector.load %arg17[%c0_18, %c0_19] : memref<8x32xf32, #tpu.memory_space<vmem>>, vector<8x32xf32>
      %23 = arith.addf %21, %22 : vector<8x32xf32>
      %c0_20 = arith.constant 0 : index
      %c0_21 = arith.constant 0 : index
      %24 = vector.load %arg12[%c0_20, %c0_21] : memref<1x32xf32, #tpu.memory_space<vmem>>, vector<1x32xf32>
      %25 = vector.broadcast %24 : vector<1x32xf32> to vector<8x32xf32>
      %26 = arith.addf %23, %25 : vector<8x32xf32>
      %c0_22 = arith.constant 0 : index
      %c0_23 = arith.constant 0 : index
      %27 = vector.load %arg13[%c0_22, %c0_23] : memref<1x32xf32, #tpu.memory_space<vmem>>, vector<1x32xf32>
      %c0_24 = arith.constant 0 : index
      %c0_25 = arith.constant 0 : index
      %28 = vector.load %arg14[%c0_24, %c0_25] : memref<1x32xf32, #tpu.memory_space<vmem>>, vector<1x32xf32>
      %cst_26 = arith.constant dense<0.000000e+00> : vector<8xf32>
      %29 = vector.multi_reduction <add>, %26, %cst_26 [1] : vector<8x32xf32> to vector<8xf32>
      %30 = vector.shape_cast %29 : vector<8xf32> to vector<8x1xf32>
      %cst_27 = arith.constant 3.200000e+01 : f32
      %31 = vector.broadcast %cst_27 : f32 to vector<8x1xf32>
      %32 = arith.divf %30, %31 : vector<8x1xf32>
      %33 = vector.broadcast %32 : vector<8x1xf32> to vector<8x32xf32>
      %34 = arith.subf %26, %33 : vector<8x32xf32>
      %35 = arith.mulf %34, %34 : vector<8x32xf32>
      %cst_28 = arith.constant dense<0.000000e+00> : vector<8xf32>
      %36 = vector.multi_reduction <add>, %35, %cst_28 [1] : vector<8x32xf32> to vector<8xf32>
      %37 = vector.shape_cast %36 : vector<8xf32> to vector<8x1xf32>
      %cst_29 = arith.constant 3.200000e+01 : f32
      %38 = vector.broadcast %cst_29 : f32 to vector<8x1xf32>
      %39 = arith.divf %37, %38 : vector<8x1xf32>
      %40 = vector.broadcast %32 : vector<8x1xf32> to vector<8x32xf32>
      %41 = arith.subf %26, %40 : vector<8x32xf32>
      %cst_30 = arith.constant 9.99999974E-6 : f32
      %42 = vector.broadcast %cst_30 : f32 to vector<8x1xf32>
      %43 = arith.addf %39, %42 : vector<8x1xf32>
      %44 = math.rsqrt %43 : vector<8x1xf32>
      %45 = vector.broadcast %44 : vector<8x1xf32> to vector<8x32xf32>
      %46 = arith.mulf %41, %45 : vector<8x32xf32>
      %47 = vector.broadcast %27 : vector<1x32xf32> to vector<8x32xf32>
      %48 = arith.mulf %46, %47 : vector<8x32xf32>
      %49 = vector.broadcast %28 : vector<1x32xf32> to vector<8x32xf32>
      %50 = arith.addf %48, %49 : vector<8x32xf32>
      %c0_31 = arith.constant 0 : index
      %c0_32 = arith.constant 0 : index
      %c0_33 = arith.constant 0 : index
      %51 = vector.load %arg15[%c0_31, %c0_32, %c0_33] : memref<1x8x32xf32, #tpu.memory_space<vmem>>, vector<1x8x32xf32>
      %52 = vector.shape_cast %51 : vector<1x8x32xf32> to vector<8x32xf32>
      %53 = vector.shape_cast %50 : vector<8x32xf32> to vector<1x8x32xf32>
      tpu.vector_store %arg15[%c0_31, %c0_32, %c0_33], %53 {strides = array<i32>} : memref<1x8x32xf32, #tpu.memory_space<vmem>>, vector<1x8x32xf32>,
    } else {
    }
    return
  }
  func.func @transform_0(%arg0: i32, %arg1: i32, %arg2: i32) -> (i32, i32, i32, i32) {
    %c0_i32 = arith.constant 0 : i32
    %c0_i32_0 = arith.constant 0 : i32
    %c0_i32_1 = arith.constant 0 : i32
    return %arg0, %c0_i32, %arg1, %c0_i32_0 : i32, i32, i32, i32
  }
  func.func @transform_1(%arg0: i32, %arg1: i32, %arg2: i32) -> (i32, i32, i32) {
    %c0_i32 = arith.constant 0 : i32
    %c0_i32_0 = arith.constant 0 : i32
    return %arg0, %arg1, %c0_i32 : i32, i32, i32
  }
  func.func @transform_2(%arg0: i32, %arg1: i32, %arg2: i32) -> (i32, i32, i32) {
    %c0_i32 = arith.constant 0 : i32
    %c0_i32_0 = arith.constant 0 : i32
    %c0_i32_1 = arith.constant 0 : i32
    %c0_i32_2 = arith.constant 0 : i32
    return %c0_i32, %c0_i32_0, %c0_i32_1 : i32, i32, i32
  }
  func.func @transform_3(%arg0: i32, %arg1: i32, %arg2: i32) -> (i32, i32) {
    %c0_i32 = arith.constant 0 : i32
    %c0_i32_0 = arith.constant 0 : i32
    %c0_i32_1 = arith.constant 0 : i32
    return %c0_i32, %c0_i32_0 : i32, i32
  }
  func.func @transform_4(%arg0: i32, %arg1: i32, %arg2: i32) -> (i32, i32) {
    %c0_i32 = arith.constant 0 : i32
    %c0_i32_0 = arith.constant 0 : i32
    %c0_i32_1 = arith.constant 0 : i32
    return %c0_i32, %c0_i32_0 : i32, i32
  }
  func.func @transform_5(%arg0: i32, %arg1: i32, %arg2: i32) -> (i32, i32) {
    %c0_i32 = arith.constant 0 : i32
    %c0_i32_0 = arith.constant 0 : i32
    %c0_i32_1 = arith.constant 0 : i32
    return %c0_i32, %c0_i32_0 : i32, i32
  }
  func.func @transform_6(%arg0: i32, %arg1: i32, %arg2: i32) -> (i32, i32) {
    %c0_i32 = arith.constant 0 : i32
    %c0_i32_0 = arith.constant 0 : i32
    return %c0_i32, %arg2 : i32, i32
  }
  func.func @transform_7(%arg0: i32, %arg1: i32, %arg2: i32) -> (i32, i32) {
    %c0_i32 = arith.constant 0 : i32
    %c0_i32_0 = arith.constant 0 : i32
    return %c0_i32, %arg2 : i32, i32
  }
  func.func @transform_8(%arg0: i32, %arg1: i32, %arg2: i32) -> (i32, i32) {
    %c0_i32 = arith.constant 0 : i32
    %c0_i32_0 = arith.constant 0 : i32
    return %arg2, %c0_i32 : i32, i32
  }
  func.func @transform_9(%arg0: i32, %arg1: i32, %arg2: i32) -> (i32, i32) {
    %c0_i32 = arith.constant 0 : i32
    %c0_i32_0 = arith.constant 0 : i32
    %c0_i32_1 = arith.constant 0 : i32
    return %c0_i32, %c0_i32_0 : i32, i32
  }
  func.func @transform_10(%arg0: i32, %arg1: i32, %arg2: i32) -> (i32, i32) {
    %c0_i32 = arith.constant 0 : i32
    %c0_i32_0 = arith.constant 0 : i32
    %c0_i32_1 = arith.constant 0 : i32
    return %c0_i32, %c0_i32_0 : i32, i32
  }
  func.func @transform_11(%arg0: i32, %arg1: i32, %arg2: i32) -> (i32, i32) {
    %c0_i32 = arith.constant 0 : i32
    %c0_i32_0 = arith.constant 0 : i32
    %c0_i32_1 = arith.constant 0 : i32
    return %c0_i32, %c0_i32_0 : i32, i32
  }
  func.func @transform_12(%arg0: i32, %arg1: i32, %arg2: i32) -> (i32, i32, i32) {
    %c0_i32 = arith.constant 0 : i32
    %c0_i32_0 = arith.constant 0 : i32
    return %arg0, %arg1, %c0_i32 : i32, i32, i32
  }
}

</mosaic_0001>

<bundles_post_ra>
// kernel: encoder_forward.7
= control target key start
LH: loop header
LB: loop body
LE: loop exit
PB: predicated region body
PF: predicated region fallthrough
CT: control target
= control target key end

     0   :  { %s355_s9 = smov 0   ;;  %s357_s10 = smov 0   ;;  %s374_s0 = inlined_call_operand.vmem [shape: f32[2,8,32], index: 0, kind: input, shape index: {}]   ;;  %s375_s1 = inlined_call_operand.vmem [shape: f32[8,32], index: 1, kind: input, shape index: {}]   ;;  %s376_s2 = inlined_call_operand.vmem [shape: f32[2,8,32], index: 2, kind: output, shape index: {}]  }
   0x1   :  { %s336_s11 = smov 0  }
   0x2 LB: > { %s24_s12 = sadd.s32 1, %s334_s10  ;;  %p287_p0 = scmp.ge.s32.totalorder %s338_s11, 1  ;;  %s338_s11 = sphi %s336_s11, %s12_s11   ;;  %s334_s10 = sphi %s357_s10, %s378_s10   ;;  %s330_s9 = sphi %s355_s9, %s377_s9  }
   0x3   : > { %p26_p1 = scmp.ge.s32.totalorder %s24_s12, 2  ;;  %p139_p2 = scmp.lt.s32.totalorder %s338_s11, 3 }
   0x5   : > { %s380_s12 = smov (%p26_p1, %s24_s12), 0  ;;  %p140_p3 = pnand %p287_p0, %p139_p2 }
   0x6   : > { %p169_p4 = scmp.lt.s32.totalorder (!%p140_p3), %s330_s9, 1 }
   0x7   : > { %143 = sbr.rel (%p140_p3) target bundleno = 19 (0x13), region = 28 }
   0xc   : > { %s382_s9 = smov (!%p169_p4, %s330_s9), 1  ;;  %v188_v0 = vld [vmem:[%s375_s1] sm:$0xff]  ;;  %vm190_vm0 = vcmask 261120  }
   0xd   : > { %s288_s13 = sshll.u32 %s382_s9, 3 }
   0xe   : > { %s175_s18 = scalar_lea.vmem %s374_s0, %s288_s13  ;;  %s186_s21 = scalar_lea.vmem %s376_s2, %s288_s13 }
   0xf   : > { %v187_v1 = vld [vmem:[%s175_s18] sm:$0xff] }
  0x10   : > { %v189_v2 = vadd.f32 %v188_v0, %v187_v1 }
  0x12   : > { %191 = vst.msk [vmem:[%s186_s21] sm:$0xff] %vm190_vm0, %v189_v2 }
  0x13 PF: > { %s12_s11 = sadd.s32 1, %s338_s11   ;;  %s377_s9 = smov %s334_s10 }
  0x14   : > { %p9_p5 = scmp.ge.s32.totalorder %s12_s11, 4   ;;  %s378_s10 = smov %s380_s12 }
  0x16   :  { %11 = sbr.rel (!%p9_p5) target bundleno = 2 (0x2), region = 61 }

// kernel: encoder_forward.8
= control target key start
LH: loop header
LB: loop body
LE: loop exit
PB: predicated region body
PF: predicated region fallthrough
CT: control target
= control target key end

     0   :  { %v124_v0 = vmov 0.0   ;;  %vm125_vm0 = vmmov 0   ;;  %vm41_vm1 = vcmask 261120   ;;  %vm94_vm2 = vcmask 781312   ;;  %s167_s1 = inlined_call_operand.vmem [shape: bf16[32,96], index: 1, kind: input, shape index: {}]   ;;  %s168_s0 = inlined_call_operand.vmem [shape: f32[16,32], index: 0, kind: input, shape index: {}]   ;;  %s169_s2 = inlined_call_operand.vmem [shape: f32[1,96], index: 2, kind: input, shape index: {}]   ;;  %s170_s3 = inlined_call_operand.vmem [shape: bf16[16,96], index: 3, kind: output, shape index: {}]  }
   0x1   :  { %112 = vmatprep.subr.bf16.mxu0 %v124_v0  ;;  %v122_v1 = vld [vmem:[%s167_s1 + $0x8] sm:$0xff]   ;;  %116 = vmatprep.mubr.msk.bf16.mxu0 %vm125_vm0, %v124_v0  ;;  %v123_v2 = vld [vmem:[%s167_s1] sm:$0xff]  }
   0x2   :  { %113 = vmatpush3.bf16.msra.mxu0 %v122_v1  ;;  %v15_v3 = vld [vmem:[%s168_s0] sm:$0xff]  ;;  %v16_v4 = vld [vmem:[%s168_s0 + $0x8] sm:$0xff] }
   0x3   :  { %114 = vmatprep.subr.bf16.mxu0 %v124_v0  ;;  %v17_v5 = vpack.c.bf16 %v16_v4, %v15_v3  ;;  %v101_v6 = vld [vmem:[%s169_s2] ss:$0 sm:$0xff] }
   0x6   :  { %115 = vmatpush3.bf16.msra.mxu0 %v123_v2 }
   0x9   :  { %117 = vmatmul.mubr.msk.bf16.vlgmr.msra.gmra.mxu0 %vm41_vm1, %v17_v5 }
  0xc9   :  { %v79_v7 = vpop.f32.mrf.mxu0 }
  0xca   :  { %v80_v8 = vadd.f32 %v101_v6, %v79_v7 }
  0xcb   :  { %v118_v9 = vpop.f32.mrf.mxu0 }
  0xcc   :  { %v107_v10 = vpack.c.bf16 %v80_v8, %v80_v8 }
  0xcd   :  { %v82_v11 = vpop.f32.mrf.mxu0 }
  0xce   :  { %95 = vst.msk [vmem:[%s170_s3] sm:$0xf] %vm94_vm2, %v107_v10  ;;  %v83_v12 = vadd.f32 %v101_v6, %v82_v11 }
  0xcf   :  { %v119_v13 = vpop.f32.mrf.mxu0 }
  0xd0   :  { %v108_v14 = vpack.c.bf16 %v83_v12, %v83_v12 }
  0xd2   :  { %96 = vst.msk [vmem:[%s170_s3 + $0x4] sm:$0xf] %vm94_vm2, %v108_v14 }

// kernel: encoder_forward.9
= control target key start
LH: loop header
LB: loop body
LE: loop exit
PB: predicated region body
PF: predicated region fallthrough
CT: control target
= control target key end

     0   :  { %s1053_s15 = smov 0   ;;  %s1055_s16 = smov 0   ;;  %s1153_s0 = inlined_call_operand.vmem [shape: bf16[2,3,4,8,8], index: 0, kind: input, shape index: {}, may-alias: {0,1,2}]   ;;  %s1154_s1 = inlined_call_operand.vmem [shape: bf16[2,3,4,8,8], index: 1, kind: input, shape index: {}, may-alias: {0,1,2}]   ;;  %s1155_s2 = inlined_call_operand.vmem [shape: bf16[2,3,4,8,8], index: 2, kind: input, shape index: {}, may-alias: {0,1,2}]   ;;  %s1156_s3 = inlined_call_operand.vmem [shape: f32[2,1,8], index: 3, kind: input, shape index: {}]   ;;  %s1157_s4 = inlined_call_operand.vmem [shape: bf16[2,4,8,8], index: 4, kind: output, shape index: {}]  }
   0x1   :  { %s1057_s17 = smov 0  }
   0x2 LB: > { %s26_s18 = sadd.s32 1, %s1020_s16  ;;  %p870_p0 = scmp.ge.s32.totalorder %s1024_s17, 1  ;;  %s1024_s17 = sphi %s1057_s17, %s14_s17   ;;  %s1020_s16 = sphi %s1055_s16, %s1159_s16   ;;  %s1016_s15 = sphi %s1053_s15, %s1158_s15  }
   0x3   : > { %p28_p1 = scmp.ge.s32.totalorder %s26_s18, 2  ;;  %p211_p2 = scmp.lt.s32.totalorder %s1024_s17, 3 }
   0x5   : > { %s1161_s18 = smov (%p28_p1, %s26_s18), 0  ;;  %p212_p3 = pnand %p870_p0, %p211_p2 }
   0x6   : > { %p258_p4 = scmp.lt.s32.totalorder (!%p212_p3), %s1016_s15, 1 }
   0x7   : > { %215 = sbr.rel (%p212_p3) target bundleno = 590 (0x24e), region = 36 }
   0xc   : > { %v1026_v0 = vmov 0.0   ;;  %s1163_s15 = smov (!%p258_p4, %s1016_s15), 1  ;;  %vm1027_vm0 = vmmov 0   ;;  %vm311_vm1 = vcmask 64512   ;;  %v306_v13 = vlaneseq }
   0xd   : > { %911 = vmatprep.subr.bf16.mxu0 %v1026_v0  ;;  %917 = vmatprep.subr.bf16.mxu1 %v1026_v0  ;;  %s1080_s19 = smul.u32 48, %s1163_s15  ;;  %s280_s28 = scalar_lea.vmem %s1156_s3, %s1163_s15  ;;  %vm539_vm2 = vcmask 1043456   ;;  %vm733_vm3 = vcmask 60416  }
   0xe   : > { %913 = vmatprep.mubr.msk.bf16.mxu0 %vm1027_vm0, %v1026_v0  ;;  %919 = vmatprep.mubr.msk.bf16.mxu1 %vm1027_vm0, %v1026_v0  ;;  %v302_v14 = vld [vmem:[%s280_s28] sm:$0x1]  ;;  %v307_v16 = vshrl.u32 %v306_v13, 7  ;;  %s894_s6 = sshll.u32 %s1163_s15, 4 }
   0xf   : > { %s801_s22 = scalar_lea.vmem %s1154_s1, %s1080_s19  ;;  %s265_s25 = scalar_lea.vmem %s1153_s0, %s1080_s19  ;;  %v303_v15 = vsub.f32 1.0, %v302_v14 }
  0x10   : > { %v876_v1 = vld [vmem:[%s801_s22 + $0x10] sm:$0xf]  ;;  %v877_v2 = vld [vmem:[%s801_s22 + $0x14] sm:$0xf]  ;;  %v878_v5 = vld [vmem:[%s801_s22 + $0x18] sm:$0xf]  ;;  %s805_s5 = scalar_lea.vmem %s1155_s2, %s1080_s19  ;;  %s288_s9 = scalar_lea.vmem %s1157_s4, %s894_s6 }
  0x11   : > { %v316_v3 = vsel %vm311_vm1, %v876_v1, 0  ;;  %v362_v4 = vsel %vm311_vm1, %v877_v2, 0  ;;  %v879_v6 = vld [vmem:[%s801_s22 + $0x1c] sm:$0xf]  ;;  %v290_v7 = vld [vmem:[%s265_s25] sm:$0xf] }
  0x12   : > { %912 = vmatpush3.bf16.xpose.msra.mxu0 %v316_v3  ;;  %918 = vmatpush3.bf16.xpose.msra.mxu1 %v362_v4  ;;  %v291_v8 = vld [vmem:[%s265_s25 + $0x4] sm:$0xf]  ;;  %v408_v9 = vsel %vm311_vm1, %v878_v5, 0  ;;  %v454_v10 = vsel %vm311_vm1, %v879_v6, 0  ;;  %v292_v11 = vld [vmem:[%s265_s25 + $0x8] sm:$0xf] }
  0x13   : > { %923 = vmatprep.subr.bf16.mxu0 %v1026_v0  ;;  %929 = vmatprep.subr.bf16.mxu1 %v1026_v0  ;;  %v293_v12 = vld [vmem:[%s265_s25 + $0xc] sm:$0xf]  ;;  %v304_v17 = vmul.f32 -1e+09, %v303_v15  ;;  %v308_v18 = vsub.s32 0, %v307_v16 }
  0x14   : > { %v880_v44 = vld [vmem:[%s805_s5 + $0x20] sm:$0xf]  ;;  %v881_v46 = vld [vmem:[%s805_s5 + $0x24] sm:$0xf]  ;;  %v882_v48 = vld [vmem:[%s805_s5 + $0x28] sm:$0xf] }
  0x15   : > { %v309_v19 = vrot.slane %v304_v17, %v308_v18  ;;  %v541_v45 = vsel %vm539_vm2, %v880_v44, 0  ;;  %v587_v47 = vsel %vm539_vm2, %v881_v46, 0  ;;  %v633_v49 = vsel %vm539_vm2, %v882_v48, 0  ;;  %v883_v50 = vld [vmem:[%s805_s5 + $0x2c] sm:$0xf] }
  0x16   : > { %v679_v51 = vsel %vm539_vm2, %v883_v50, 0 }
  0x19   : > { %914 = vmatmul.mubr.msk.bf16.vlgmr.msra.gmra.mxu0 %vm311_vm1, %v290_v7  ;;  %920 = vmatmul.mubr.msk.bf16.vlgmr.msra.gmra.mxu1 %vm311_vm1, %v291_v8 }
  0x1a   : > { %924 = vmatpush3.bf16.xpose.msra.mxu0 %v408_v9  ;;  %930 = vmatpush3.bf16.xpose.msra.mxu1 %v454_v10 }
  0x1b   : > { %925 = vmatprep.mubr.msk.bf16.mxu0 %vm1027_vm0, %v1026_v0  ;;  %931 = vmatprep.mubr.msk.bf16.mxu1 %vm1027_vm0, %v1026_v0 }
  0x1c   : > { %935 = vmatprep.subr.bf16.mxu0 %v1026_v0  ;;  %941 = vmatprep.subr.bf16.mxu1 %v1026_v0 }
  0x21   : > { %926 = vmatmul.mubr.msk.bf16.vlgmr.msra.gmra.mxu0 %vm311_vm1, %v292_v11  ;;  %932 = vmatmul.mubr.msk.bf16.vlgmr.msra.gmra.mxu1 %vm311_vm1, %v293_v12 }
  0x22   : > { %937 = vmatprep.mubr.msk.bf16.mxu0 %vm1027_vm0, %v1026_v0  ;;  %943 = vmatprep.mubr.msk.bf16.mxu1 %vm1027_vm0, %v1026_v0 }
  0x23   : > { %936 = vmatpush3.bf16.msra.mxu0 %v541_v45  ;;  %942 = vmatpush3.bf16.msra.mxu1 %v587_v47 }
  0x24   : > { %947 = vmatprep.subr.bf16.mxu0 %v1026_v0  ;;  %953 = vmatprep.subr.bf16.mxu1 %v1026_v0 }
  0xd9   : > { %v352_v20 = vpop.f32.mrf.mxu0  ;;  %v398_v21 = vpop.f32.mrf.mxu1 }
  0xda   : > { %v353_v22 = vadd.f32 %v352_v20, %v309_v19  ;;  %v399_v23 = vadd.f32 %v398_v21, %v309_v19 }
  0xdb   : > { %v915_v24 = vpop.f32.mrf.mxu0  ;;  %v921_v25 = vpop.f32.mrf.mxu1 }
  0xdc   : > { %v496_v26 = vsel %vm311_vm1, %v353_v22, -inf  ;;  %v499_v29 = vsel %vm311_vm1, %v399_v23, -inf }
  0xdd   : > { %v401_v27 = vpop.f32.mrf.mxu1  ;;  %497 = vmax.xlane.f32.xlu0 %v496_v26  ;;  %v355_v28 = vpop.f32.mrf.mxu0 }
  0xdf   : > { %v916_v30 = vpop.f32.mrf.mxu0  ;;  %v922_v31 = vpop.f32.mrf.mxu1 }
  0xe1   : > { %v490_v32 = vpop.f32.mrf.mxu1  ;;  %500 = vmax.xlane.f32.xlu0 %v499_v29  ;;  %v444_v33 = vpop.f32.mrf.mxu0 }
  0xe2   : > { %v491_v34 = vadd.f32 %v490_v32, %v309_v19  ;;  %v445_v35 = vadd.f32 %v444_v33, %v309_v19 }
  0xe3   : > { %v927_v36 = vpop.f32.mrf.mxu0  ;;  %v933_v37 = vpop.f32.mrf.mxu1 }
  0xe4   : > { %v502_v38 = vsel %vm311_vm1, %v445_v35, -inf  ;;  %v505_v41 = vsel %vm311_vm1, %v491_v34, -inf }
  0xe5   : > { %v493_v39 = vpop.f32.mrf.mxu1  ;;  %503 = vmax.xlane.f32.xlu1 %v502_v38  ;;  %v447_v40 = vpop.f32.mrf.mxu0 }
  0xe7   : > { %v928_v42 = vpop.f32.mrf.mxu0  ;;  %v934_v43 = vpop.f32.mrf.mxu1 }
  0xe9   : > { %506 = vmax.xlane.f32.xlu1 %v505_v41 }
 0x166   : > { %v498_v52 = vpop.xlane.xlu0 %497 }
 0x167   : > { %v508_v53 = vsub.f32 %v353_v22, %v498_v52 }
 0x169   : > { %v512_v54 = vmul.f32 1.442695, %v508_v53 }
 0x16a   : > { %v501_v55 = vpop.xlane.xlu0 %500 }
 0x16b   : > { %986 = vpow2.f32 %v512_v54  ;;  %v509_v56 = vsub.f32 %v399_v23, %v501_v55 }
 0x16d   : > { %v514_v57 = vmul.f32 1.442695, %v509_v56 }
 0x16e   : > { %v504_v58 = vpop.xlane.xlu1 %503 }
 0x16f   : > { %988 = vpow2.f32 %v514_v57  ;;  %v510_v59 = vsub.f32 %v445_v35, %v504_v58 }
 0x171   : > { %v516_v60 = vmul.f32 1.442695, %v510_v59 }
 0x172   : > { %v507_v61 = vpop.xlane.xlu1 %506 }
 0x173   : > { %990 = vpow2.f32 %v516_v60  ;;  %v511_v62 = vsub.f32 %v491_v34, %v507_v61 }
 0x175   : > { %v518_v63 = vmul.f32 1.442695, %v511_v62 }
 0x177   : > { %992 = vpow2.f32 %v518_v63 }
 0x178   : > { %v987_v1 = vpop.eup %986 }
 0x179   : > { %v520_v2 = vsel %vm311_vm1, %v987_v1, 0.0  ;;  %v532_v3 = vpack.c.bf16 %v987_v1, %v987_v1 }
 0x17a   : > { %521 = vadd.xlane.f32.xlu0 %v520_v2 }
 0x17b   : > { %938 = vmatmul.mubr.msk.bf16.vlgmr.msra.gmra.mxu0 %vm311_vm1, %v532_v3 }
 0x17c   : > { %v989_v4 = vpop.eup %988  ;;  %948 = vmatpush3.bf16.msra.mxu0 %v633_v49  ;;  %949 = vmatprep.mubr.msk.bf16.mxu0 %vm1027_vm0, %v1026_v0 }
 0x17d   : > { %v523_v5 = vsel %vm311_vm1, %v989_v4, 0.0  ;;  %v533_v6 = vpack.c.bf16 %v989_v4, %v989_v4 }
 0x17e   : > { %524 = vadd.xlane.f32.xlu1 %v523_v5 }
 0x17f   : > { %944 = vmatmul.mubr.msk.bf16.vlgmr.msra.gmra.mxu1 %vm311_vm1, %v533_v6 }
 0x180   : > { %v991_v7 = vpop.eup %990  ;;  %954 = vmatpush3.bf16.msra.mxu1 %v679_v51  ;;  %955 = vmatprep.mubr.msk.bf16.mxu1 %vm1027_vm0, %v1026_v0 }
 0x181   : > { %v526_v8 = vsel %vm311_vm1, %v991_v7, 0.0  ;;  %v534_v9 = vpack.c.bf16 %v991_v7, %v991_v7 }
 0x182   : > { %527 = vadd.xlane.f32.xlu0 %v526_v8 }
 0x183   : > { %950 = vmatmul.mubr.msk.bf16.vlgmr.msra.gmra.mxu0 %vm311_vm1, %v534_v9 }
 0x184   : > { %v993_v10 = vpop.eup %992 }
 0x185   : > { %v529_v11 = vsel %vm311_vm1, %v993_v10, 0.0  ;;  %v535_v12 = vpack.c.bf16 %v993_v10, %v993_v10 }
 0x186   : > { %530 = vadd.xlane.f32.xlu1 %v529_v11 }
 0x187   : > { %956 = vmatmul.mubr.msk.bf16.vlgmr.msra.gmra.mxu1 %vm311_vm1, %v535_v12 }
 0x203   : > { %v522_v13 = vpop.xlane.xlu0 %521 }
 0x204   : > { %994 = vrcp.f32 %v522_v13 }
 0x207   : > { %v525_v14 = vpop.xlane.xlu1 %524 }
 0x208   : > { %996 = vrcp.f32 %v525_v14 }
 0x20b   : > { %v528_v15 = vpop.xlane.xlu0 %527 }
 0x20c   : > { %998 = vrcp.f32 %v528_v15 }
 0x20f   : > { %v531_v0 = vpop.xlane.xlu1 %530 }
 0x210   : > { %1000 = vrcp.f32 %v531_v0 }
 0x211   : > { %v995_v16 = vpop.eup %994 }
 0x215   : > { %v997_v21 = vpop.eup %996 }
 0x219   : > { %v999_v28 = vpop.eup %998 }
 0x21d   : > { %v1001_v35 = vpop.eup %1000 }
 0x23b   : > { %v577_v17 = vpop.f32.mrf.mxu0 }
 0x23c   : > { %v725_v18 = vmul.f32 %v995_v16, %v577_v17 }
 0x23d   : > { %v939_v19 = vpop.f32.mrf.mxu0 }
 0x23e   : > { %v729_v20 = vpack.c.bf16 %v725_v18, %v725_v18 }
 0x23f   : > { %v580_v22 = vpop.f32.mrf.mxu0  ;;  %v623_v23 = vpop.f32.mrf.mxu1 }
 0x240   : > { %734 = vst.msk [vmem:[%s288_s9] sm:$0xf] %vm733_vm3, %v729_v20  ;;  %v726_v24 = vmul.f32 %v997_v21, %v623_v23 }
 0x241   : > { %v940_v25 = vpop.f32.mrf.mxu0  ;;  %v945_v26 = vpop.f32.mrf.mxu1 }
 0x242   : > { %v730_v27 = vpack.c.bf16 %v726_v24, %v726_v24 }
 0x243   : > { %v626_v29 = vpop.f32.mrf.mxu1  ;;  %v669_v30 = vpop.f32.mrf.mxu0 }
 0x244   : > { %735 = vst.msk [vmem:[%s288_s9 + $0x4] sm:$0xf] %vm733_vm3, %v730_v27  ;;  %v727_v31 = vmul.f32 %v999_v28, %v669_v30 }
 0x245   : > { %v946_v32 = vpop.f32.mrf.mxu1  ;;  %v951_v33 = vpop.f32.mrf.mxu0 }
 0x246   : > { %v731_v34 = vpack.c.bf16 %v727_v31, %v727_v31 }
 0x247   : > { %v672_v36 = vpop.f32.mrf.mxu0  ;;  %v715_v37 = vpop.f32.mrf.mxu1 }
 0x248   : > { %736 = vst.msk [vmem:[%s288_s9 + $0x8] sm:$0xf] %vm733_vm3, %v731_v34  ;;  %v728_v38 = vmul.f32 %v1001_v35, %v715_v37 }
 0x249   : > { %v952_v39 = vpop.f32.mrf.mxu0  ;;  %v957_v40 = vpop.f32.mrf.mxu1 }
 0x24a   : > { %v732_v41 = vpack.c.bf16 %v728_v38, %v728_v38 }
 0x24b   : > { %v718_v42 = vpop.f32.mrf.mxu1 }
 0x24c   : > { %737 = vst.msk [vmem:[%s288_s9 + $0xc] sm:$0xf] %vm733_vm3, %v732_v41 }
 0x24d   : > { %v958_v43 = vpop.f32.mrf.mxu1 }
 0x24e PF: > { %s14_s17 = sadd.s32 1, %s1024_s17   ;;  %s1158_s15 = smov %s1020_s16 }
 0x24f   : > { %p11_p5 = scmp.ge.s32.totalorder %s14_s17, 4   ;;  %s1159_s16 = smov %s1161_s18 }
 0x251   :  { %13 = sbr.rel (!%p11_p5) target bundleno = 2 (0x2), region = 75 }

// kernel: encoder_forward.10
= control target key start
LH: loop header
LB: loop body
LE: loop exit
PB: predicated region body
PF: predicated region fallthrough
CT: control target
= control target key end

     0   :  { %s1341_s21 = smov 0   ;;  %s1343_s22 = smov 0   ;;  %s1476_s0 = inlined_call_operand.vmem [shape: bf16[2,4,8,8], index: 0, kind: input, shape index: {}]   ;;  %s1477_s1 = inlined_call_operand.vmem [shape: f32[2,8,32], index: 1, kind: input, shape index: {}]   ;;  %s1478_s2 = inlined_call_operand.vmem [shape: bf16[4,8,32], index: 2, kind: input, shape index: {}]   ;;  %s1479_s3 = inlined_call_operand.vmem [shape: f32[1,32], index: 3, kind: input, shape index: {}]   ;;  %s1480_s4 = inlined_call_operand.vmem [shape: f32[1,32], index: 4, kind: input, shape index: {}]   ;;  %s1481_s5 = inlined_call_operand.vmem [shape: f32[1,32], index: 5, kind: input, shape index: {}]   ;;  %s1482_s6 = inlined_call_operand.vmem [shape: bf16[32,64], index: 6, kind: input, shape index: {}]   ;;  %s1483_s7 = inlined_call_operand.vmem [shape: f32[1,64], index: 7, kind: input, shape index: {}]   ;;  %s1484_s8 = inlined_call_operand.vmem [shape: bf16[64,32], index: 8, kind: input, shape index: {}]   ;;  %s1485_s9 = inlined_call_operand.vmem [shape: f32[1,32], index: 9, kind: input, shape index: {}]   ;;  %s1486_s10 = inlined_call_operand.vmem [shape: f32[1,32], index: 10, kind: input, shape index: {}]   ;;  %s1487_s11 = inlined_call_operand.vmem [shape: f32[1,32], index: 11, kind: input, shape index: {}]   ;;  %s1488_s12 = inlined_call_operand.vmem [shape: f32[2,8,32], index: 12, kind: output, shape index: {}]  }
   0x1   :  { %s1345_s23 = smov 0  }
   0x2 LB: > { %s41_s24 = sadd.s32 1, %s1268_s22  ;;  %p1121_p0 = scmp.ge.s32.totalorder %s1272_s23, 1  ;;  %s1272_s23 = sphi %s1345_s23, %s22_s23   ;;  %s1268_s22 = sphi %s1343_s22, %s1490_s22   ;;  %s1264_s21 = sphi %s1341_s21, %s1489_s21  }
   0x3   : > { %p43_p1 = scmp.ge.s32.totalorder %s41_s24, 2  ;;  %p430_p2 = scmp.lt.s32.totalorder %s1272_s23, 3 }
   0x5   : > { %s1492_s24 = smov (%p43_p1, %s41_s24), 0  ;;  %p431_p3 = pnand %p1121_p0, %p430_p2 }
   0x6   : > { %p496_p4 = scmp.lt.s32.totalorder (!%p431_p3), %s1264_s21, 1 }
   0x7   : > { %434 = sbr.rel (%p431_p3) target bundleno = 1260 (0x4ec), region = 68 }
   0xc   : > { %v1127_v0 = vld [vmem:[%s1478_s2 + $0x4] sm:$0xf]  ;;  %vm546_vm0 = vcmask 1043456   ;;  %v537_v1 = vld [vmem:[%s1478_s2] sm:$0xf]  ;;  %v1274_v2 = vmov 0.0  }
   0xd   : > { %1170 = vmatprep.subr.bf16.mxu0 %v1274_v2  ;;  %v548_v3 = vsel %vm546_vm0, %v1127_v0, 0  ;;  %1176 = vmatprep.subr.bf16.mxu1 %v1274_v2  ;;  %v594_v4 = vsel %vm546_vm0, %v537_v1, 0  ;;  %v1131_v5 = vld [vmem:[%s1478_s2 + $0x8] sm:$0xf]  ;;  %v1134_v6 = vld [vmem:[%s1478_s2 + $0xc] sm:$0xf] }
   0xe   : > { %1171 = vmatpush3.bf16.msra.mxu0 %v548_v3  ;;  %1177 = vmatpush3.bf16.msra.mxu1 %v594_v4  ;;  %vm1275_vm1 = vmmov 0   ;;  %s1494_s21 = smov (!%p496_p4, %s1264_s21), 1  ;;  %vm542_vm2 = vcmask 64512   ;;  %v644_v7 = vsel %vm546_vm0, %v1131_v5, 0  ;;  %v695_v8 = vsel %vm546_vm0, %v1134_v6, 0  ;;  %v1240_v42 = vld [vmem:[%s1482_s6 + $0x8] sm:$0xff]  }
   0xf   : > { %1172 = vmatprep.mubr.msk.bf16.mxu0 %vm1275_vm1, %v1274_v2  ;;  %1178 = vmatprep.mubr.msk.bf16.mxu1 %vm1275_vm1, %v1274_v2  ;;  %s1153_s15 = sshll.u32 %s1494_s21, 4  ;;  %vm750_vm3 = vcmask 261120   ;;  %s1124_s19 = sshll.u32 %s1494_s21, 3  ;;  %v1136_v25 = vld [vmem:[%s1479_s3] ss:$0 sm:$0xff]  ;;  %v1242_v44 = vld [vmem:[%s1484_s8 + $0x18] sm:$0xff]  }
  0x10   : > { %1182 = vmatprep.subr.bf16.mxu0 %v1274_v2  ;;  %1188 = vmatprep.subr.bf16.mxu1 %v1274_v2  ;;  %s503_s18 = scalar_lea.vmem %s1476_s0, %s1153_s15  ;;  %780 = vst.msk [vmem:[#allocation3] sm:$0xff] %vm750_vm3, %v1274_v2  ;;  %s510_s26 = scalar_lea.vmem %s1477_s1, %s1124_s19  ;;  %v1241_v43 = vld [vmem:[%s1482_s6] sm:$0xff]   ;;  %v1243_v45 = vld [vmem:[%s1484_s8 + $0x10] sm:$0xff]   ;;  %v1244_v57 = vld [vmem:[%s1484_s8 + $0x8] sm:$0xff]   ;;  %vm885_vm4 = vcmask 523264  }
  0x11   : > { %v1126_v9 = vld [vmem:[%s503_s18 + $0x4] sm:$0xf]  ;;  %v536_v10 = vld [vmem:[%s503_s18] sm:$0xf]  ;;  %v1130_v11 = vld [vmem:[%s503_s18 + $0x8] sm:$0xf]  ;;  %s530_s29 = scalar_lea.vmem %s1488_s12, %s1124_s19 }
  0x12   : > { %1173 = vmatmul.mubr.msk.bf16.vlgmr.msra.gmra.mxu0 %vm542_vm2, %v1126_v9  ;;  %1179 = vmatmul.mubr.msk.bf16.vlgmr.msra.gmra.mxu1 %vm542_vm2, %v536_v10  ;;  %v1133_v12 = vld [vmem:[%s503_s18 + $0xc] sm:$0xf]  ;;  %v746_v31 = vld [vmem:[%s510_s26] sm:$0xff] }
  0x13   : > { %1183 = vmatpush3.bf16.msra.mxu0 %v644_v7  ;;  %1189 = vmatpush3.bf16.msra.mxu1 %v695_v8  ;;  %v1137_v50 = vld [vmem:[%s1480_s4] ss:$0 sm:$0xff] }
  0x14   : > { %1184 = vmatprep.mubr.msk.bf16.mxu0 %vm1275_vm1, %v1274_v2  ;;  %1190 = vmatprep.mubr.msk.bf16.mxu1 %vm1275_vm1, %v1274_v2  ;;  %v1138_v52 = vld [vmem:[%s1481_s5] ss:$0 sm:$0xff] }
  0x15   : > { %1194 = vmatprep.subr.bf16.mxu0 %v1274_v2  ;;  %1202 = vmatprep.subr.bf16.mxu1 %v1274_v2  ;;  %v1245_v58 = vld [vmem:[%s1484_s8] sm:$0xff]  }
  0x16   : > { %v1139_v59 = vld [vmem:[%s1483_s7] ss:$0 sm:$0xff] }
  0x17   : > { %v851_v4 = vld [vmem:[#allocation3] sm:$0xff]  ;;  %v1148_v10 = vld [vmem:[%s1485_s9] ss:$0 sm:$0xff] }
  0x1a   : > { %1185 = vmatmul.mubr.msk.bf16.vlgmr.msra.gmra.mxu0 %vm542_vm2, %v1130_v11  ;;  %1191 = vmatmul.mubr.msk.bf16.vlgmr.msra.gmra.mxu1 %vm542_vm2, %v1133_v12 }
  0x1b   : > { %1198 = vmatprep.mubr.msk.bf16.mxu0 %vm1275_vm1, %v1274_v2  ;;  %1210 = vmatprep.mubr.msk.bf16.mxu1 %vm1275_vm1, %v1274_v2 }
  0x1c   : > { %1195 = vmatpush3.bf16.msra.mxu0 %v1240_v42  ;;  %1203 = vmatpush3.bf16.msra.mxu1 %v1242_v44 }
  0x1d   : > { %1196 = vmatprep.subr.bf16.mxu0 %v1274_v2  ;;  %1204 = vmatprep.subr.bf16.mxu1 %v1274_v2 }
  0x20   : > { %1197 = vmatpush3.bf16.msra.mxu0 %v1241_v43  ;;  %1205 = vmatpush3.bf16.msra.mxu1 %v1243_v45 }
  0x21   : > { %1206 = vmatprep.subr.bf16.mxu1 %v1274_v2 }
  0x24   : > { %1207 = vmatpush3.bf16.msra.mxu1 %v1244_v57 }
  0x25   : > { %1208 = vmatprep.subr.bf16.mxu1 %v1274_v2 }
  0x28   : > { %1209 = vmatpush3.bf16.msra.mxu1 %v1245_v58 }
  0xd2   : > { %v584_v13 = vpop.f32.mrf.mxu0  ;;  %v630_v14 = vpop.f32.mrf.mxu1 }
  0xd3   : > { %v631_v21 = vadd.f32 %v630_v14, %v584_v13 }
  0xd4   : > { %v1174_v15 = vpop.f32.mrf.mxu0  ;;  %v1180_v16 = vpop.f32.mrf.mxu1 }
  0xd6   : > { %v587_v17 = vpop.f32.mrf.mxu0  ;;  %v633_v18 = vpop.f32.mrf.mxu1 }
  0xd8   : > { %v1175_v19 = vpop.f32.mrf.mxu0  ;;  %v1181_v20 = vpop.f32.mrf.mxu1 }
  0xda   : > { %v680_v22 = vpop.f32.mrf.mxu0  ;;  %v731_v23 = vpop.f32.mrf.mxu1 }
  0xdb   : > { %v686_v24 = vadd.f32 %v680_v22, %v631_v21 }
  0xdc   : > { %v1186_v26 = vpop.f32.mrf.mxu0  ;;  %v1192_v27 = vpop.f32.mrf.mxu1 }
  0xdd   : > { %v737_v28 = vadd.f32 %v731_v23, %v686_v24  ;;  %v1149_v23 = vld [vmem:[%s1486_s10] ss:$0 sm:$0xff] }
  0xde   : > { %v683_v29 = vpop.f32.mrf.mxu0  ;;  %v734_v30 = vpop.f32.mrf.mxu1 }
  0xdf   : > { %v745_v32 = vadd.f32 %v1136_v25, %v737_v28  ;;  %v1150_v25 = vld [vmem:[%s1487_s11] ss:$0 sm:$0xff] }
  0xe0   : > { %v1187_v33 = vpop.f32.mrf.mxu0  ;;  %v1193_v34 = vpop.f32.mrf.mxu1 }
  0xe1   : > { %v747_v35 = vadd.f32 %v746_v31, %v745_v32 }
  0xe3   : > { %v751_v36 = vsel %vm750_vm3, %v747_v35, 0.0 }
  0xe4   : > { %752 = vadd.xlane.f32.xlu0 %v751_v36 }
 0x16d   : > { %v753_v37 = vpop.xlane.xlu0 %752 }
 0x16e   : > { %v755_v38 = vmul.f32 0.03125, %v753_v37 }
 0x170   : > { %v756_v39 = vsub.f32 %v747_v35, %v755_v38 }
 0x172   : > { %v757_v40 = vmul.f32 %v756_v39, %v756_v39 }
 0x174   : > { %v758_v41 = vsel %vm750_vm3, %v757_v40, 0.0 }
 0x175   : > { %759 = vadd.xlane.f32.xlu0 %v758_v41 }
 0x1fe   : > { %v760_v46 = vpop.xlane.xlu0 %759 }
 0x1ff   : > { %v761_v47 = vmul.f32 0.03125, %v760_v46 }
 0x201   : > { %v762_v48 = vadd.f32 1e-05, %v761_v47 }
 0x203   : > { %1246 = vrsqrt.f32 %v762_v48 }
 0x210   : > { %v1247_v49 = vpop.eup %1246 }
 0x211   : > { %v764_v51 = vmul.f32 %v1247_v49, %v756_v39 }
 0x213   : > { %v771_v53 = vmul.f32 %v1137_v50, %v764_v51 }
 0x215   : > { %v778_v54 = vadd.f32 %v1138_v52, %v771_v53 }
 0x217   : > { %779 = vst.msk [vmem:[#allocation2] sm:$0xff] %vm750_vm3, %v778_v54 }
 0x21e   : > { %v781_v55 = vld [vmem:[#allocation2] sm:$0xff] }
 0x21f   : > { %v782_v56 = vpack.c.bf16 %v781_v55, %v781_v55 }
 0x221   : > { %1199 = vmatmul.mubr.msk.bf16.vlgmr.msra.gmra.mxu0 %vm750_vm3, %v782_v56 }
 0x2e1   : > { %v844_v60 = vpop.f32.mrf.mxu0 }
 0x2e2   : > { %v845_v61 = vadd.f32 %v1139_v59, %v844_v60 }
 0x2e3   : > { %v1200_v62 = vpop.f32.mrf.mxu0 }
 0x2e4   : > { %v850_v63 = vmax.f32 %v845_v61, 0.0 }
 0x2e5   : > { %v847_v0 = vpop.f32.mrf.mxu0 }
 0x2e6   : > { %v852_v1 = vpack.c.bf16 %v850_v63, %v850_v63 }
 0x2e7   : > { %v1201_v3 = vpop.f32.mrf.mxu0 }
 0x2e8   : > { %1211 = vmatmul.mubr.msk.bf16.vlgmr.msra.gmra.mxu1 %vm885_vm4, %v852_v1 }
 0x3a8   : > { %v923_v2 = vpop.f32.mrf.mxu1 }
 0x3a9   : > { %v929_v5 = vadd.f32 %v923_v2, %v851_v4 }
 0x3aa   : > { %v1212_v6 = vpop.f32.mrf.mxu1 }
 0x3ab   : > { %930 = vst.msk [vmem:[#allocation3] sm:$0xff] %vm750_vm3, %v929_v5 }
 0x3ac   : > { %v926_v7 = vpop.f32.mrf.mxu1 }
 0x3ae   : > { %v1213_v8 = vpop.f32.mrf.mxu1 }
 0x3b2   : > { %v935_v9 = vld [vmem:[#allocation3] sm:$0xff] }
 0x3b3   : > { %v936_v11 = vadd.f32 %v935_v9, %v781_v55 }
 0x3b5   : > { %v944_v12 = vadd.f32 %v1148_v10, %v936_v11 }
 0x3b7   : > { %v947_v13 = vsel %vm750_vm3, %v944_v12, 0.0 }
 0x3b8   : > { %948 = vadd.xlane.f32.xlu1 %v947_v13 }
 0x441   : > { %v949_v14 = vpop.xlane.xlu1 %948 }
 0x442   : > { %v951_v15 = vmul.f32 0.03125, %v949_v14 }
 0x444   : > { %v952_v16 = vsub.f32 %v944_v12, %v951_v15 }
 0x446   : > { %v953_v17 = vmul.f32 %v952_v16, %v952_v16 }
 0x448   : > { %v954_v18 = vsel %vm750_vm3, %v953_v17, 0.0 }
 0x449   : > { %955 = vadd.xlane.f32.xlu1 %v954_v18 }
 0x4d2   : > { %v956_v19 = vpop.xlane.xlu1 %955 }
 0x4d3   : > { %v957_v20 = vmul.f32 0.03125, %v956_v19 }
 0x4d5   : > { %v958_v21 = vadd.f32 1e-05, %v957_v20 }
 0x4d7   : > { %1248 = vrsqrt.f32 %v958_v21 }
 0x4e4   : > { %v1249_v22 = vpop.eup %1248 }
 0x4e5   : > { %v960_v24 = vmul.f32 %v1249_v22, %v952_v16 }
 0x4e7   : > { %v967_v26 = vmul.f32 %v1149_v23, %v960_v24 }
 0x4e9   : > { %v974_v27 = vadd.f32 %v1150_v25, %v967_v26 }
 0x4eb   : > { %975 = vst.msk [vmem:[%s530_s29] sm:$0xff] %vm750_vm3, %v974_v27 }
 0x4ec PF: > { %s22_s23 = sadd.s32 1, %s1272_s23   ;;  %s1489_s21 = smov %s1268_s22 }
 0x4ed   : > { %p19_p5 = scmp.ge.s32.totalorder %s22_s23, 4   ;;  %s1490_s22 = smov %s1492_s24 }
 0x4ef   :  { %21 = sbr.rel (!%p19_p5) target bundleno = 2 (0x2), region = 124 }

// kernel: encoder_forward.13
= control target key start
LH: loop header
LB: loop body
LE: loop exit
PB: predicated region body
PF: predicated region fallthrough
CT: control target
= control target key end

     0   :  { %s1631_s0 = inlined_call_operand.vmem [shape: bf16[2,4,8,8], index: 0, kind: input, shape index: {}]   ;;  %s1632_s1 = inlined_call_operand.vmem [shape: f32[2,8,32], index: 1, kind: input, shape index: {}]   ;;  %s1633_s2 = inlined_call_operand.vmem [shape: bf16[4,8,32], index: 2, kind: input, shape index: {}]   ;;  %s1634_s3 = inlined_call_operand.vmem [shape: f32[1,32], index: 3, kind: input, shape index: {}]   ;;  %s1635_s4 = inlined_call_operand.vmem [shape: f32[1,32], index: 4, kind: input, shape index: {}]   ;;  %s1636_s5 = inlined_call_operand.vmem [shape: f32[1,32], index: 5, kind: input, shape index: {}]   ;;  %s1637_s6 = inlined_call_operand.vmem [shape: bf16[32,64], index: 6, kind: input, shape index: {}]   ;;  %s1638_s7 = inlined_call_operand.vmem [shape: f32[1,64], index: 7, kind: input, shape index: {}]   ;;  %s1639_s8 = inlined_call_operand.vmem [shape: bf16[64,32], index: 8, kind: input, shape index: {}]   ;;  %s1640_s9 = inlined_call_operand.vmem [shape: f32[1,32], index: 9, kind: input, shape index: {}]   ;;  %s1641_s10 = inlined_call_operand.vmem [shape: f32[1,32], index: 10, kind: input, shape index: {}]   ;;  %s1642_s11 = inlined_call_operand.vmem [shape: f32[1,32], index: 11, kind: input, shape index: {}]   ;;  %s1643_s12 = inlined_call_operand.hbm [shape: f32[2,8,32], index: 12, kind: output, shape index: {}]  }
   0x1   :  { %1644 = sst [smem:[#allocation7_spill]] %s1631_s0 }
   0x2   :  { %1645 = sst [smem:[#allocation8_spill]] %s1632_s1 }
   0x3   :  { %1646 = sst [smem:[#allocation9_spill]] %s1633_s2 }
   0x4   :  { %1647 = sst [smem:[#allocation10_spill]] %s1634_s3 }
   0x5   :  { %1648 = sst [smem:[#allocation11_spill]] %s1635_s4 }
   0x6   :  { %17 = vsyncpa [#allocation5], 0 }
   0x7   :  { %19 = vsyncpa [#allocation5 + $0x1], 0  ;;  %s1434_s21 = smov 0   ;;  %s1436_s22 = smov 0  }
   0x8   :  { %s1438_s23 = smov 0   ;;  %s1440_s24 = smov 0  }
   0x9   :  { %s1442_s25 = smov 0   ;;  %s1444_s26 = smov 0  }
   0xa LB: > { %s1119_s27 = sadd.s32 4294967295, %s1364_s26   ;;  %s1120_s28 = sadd.s32 4294967294, %s1364_s26   ;;  %s1364_s26 = sphi %s1444_s26, %s25_s26   ;;  %s1360_s25 = sphi %s1442_s25, %s1660_s25   ;;  %s1356_s24 = sphi %s1440_s24, %s1659_s24   ;;  %s1352_s23 = sphi %s1438_s23, %s1658_s23   ;;  %s1348_s22 = sphi %s1436_s22, %s1657_s22   ;;  %s1344_s21 = sphi %s1434_s21, %s1656_s21  }
   0xb   : > { %s44_s29 = sadd.s32 1, %s1360_s25  ;;  %s334_s30 = sadd.s32 1, %s1352_s23 }
   0xc   : > { %p46_p0 = scmp.ge.s32.totalorder %s44_s29, 2  ;;  %p344_p1 = scmp.ne.s32.totalorder %s1352_s23, %s1348_s22 }
   0xd   : > { %p345_p2 = scmp.eq.s32.totalorder %s1119_s27, 1  ;;  %p350_p3 = scmp.ne.s32.totalorder %s1348_s22, %s1344_s21 }
   0xe   : > { %s1662_s29 = smov (%p46_p0, %s44_s29), 0  ;;  %p351_p5 = scmp.eq.s32.totalorder %s1120_s28, 1 }
   0xf   : > { %p1474_p4 = por %p345_p2, %p344_p1  ;;  %s329_s14 = ssub.s32 %s1360_s25, %s1662_s29 }
  0x10   : > { %p1126_p6 = scmp.ge.s32.totalorder %s1364_s26, 1  ;;  %p332_p7 = scmp.eq.s32.totalorder %s329_s14, 0 }
  0x11   : > { %p1481_p8 = por %p351_p5, %p350_p3  ;;  %p433_p9 = scmp.lt.s32.totalorder %s1364_s26, 3 }
  0x12   : > { %s1487_s16 = scalar_select %p332_p7, %s1352_s23, %s334_s30  }
  0x13   : > { %p434_p10 = pnand %p1126_p6, %p433_p9 }
  0x14   : > { %s1651_s2 = sld [smem:[#allocation9_spill]] (!%p434_p10)  ;;  %p497_p11 = scmp.lt.s32.totalorder (!%p434_p10), %s1356_s24, 1 }
  0x15   : > { %437 = sbr.rel (%p434_p10) target bundleno = 1287 (0x507), region = 68  ;;  %s1652_s0 = sld [smem:[#allocation7_spill]] (!%p434_p10) }
  0x16   : > { %s1653_s1 = sld [smem:[#allocation8_spill]] (!%p434_p10)  ;;  %s494_s14 = sand.u32 (!%p434_p10), 1, %s1348_s22  }
  0x17   : > { %s1654_s3 = sld [smem:[#allocation10_spill]] (!%p434_p10)  ;;  %s1368_s20 = smov (!%p434_p10), [#allocation4]  }
  0x18   : > { %s1655_s4 = sld [smem:[#allocation11_spill]] (!%p434_p10) }
  0x1a   : > { %v1132_v0 = vld [vmem:[%s1651_s2 + $0x4] sm:$0xf]  ;;  %vm540_vm0 = vcmask 1043456   ;;  %v531_v1 = vld [vmem:[%s1651_s2] sm:$0xf]  ;;  %v1366_v2 = vmov 0.0  }
  0x1b   : > { %1177 = vmatprep.subr.bf16.mxu0 %v1366_v2  ;;  %v542_v3 = vsel %vm540_vm0, %v1132_v0, 0  ;;  %1183 = vmatprep.subr.bf16.mxu1 %v1366_v2  ;;  %v588_v4 = vsel %vm540_vm0, %v531_v1, 0  ;;  %v1136_v5 = vld [vmem:[%s1651_s2 + $0x8] sm:$0xf]  ;;  %v1139_v6 = vld [vmem:[%s1651_s2 + $0xc] sm:$0xf] }
  0x1c   : > { %1178 = vmatpush3.bf16.msra.mxu0 %v542_v3  ;;  %1184 = vmatpush3.bf16.msra.mxu1 %v588_v4  ;;  %vm1367_vm1 = vmmov 0   ;;  %s1511_s17 = scalar_select %p497_p11, %s1356_s24, 1  ;;  %vm536_vm2 = vcmask 64512   ;;  %v638_v7 = vsel %vm540_vm0, %v1136_v5, 0  ;;  %v689_v8 = vsel %vm540_vm0, %v1139_v6, 0  ;;  %v1278_v42 = vld [vmem:[%s1637_s6 + $0x8] sm:$0xff]  }
  0x1d   : > { %1179 = vmatprep.mubr.msk.bf16.mxu0 %vm1367_vm1, %v1366_v2  ;;  %1185 = vmatprep.mubr.msk.bf16.mxu1 %vm1367_vm1, %v1366_v2  ;;  %vm744_vm3 = vcmask 261120   ;;  %v1141_v25 = vld [vmem:[%s1654_s3] ss:$0 sm:$0xff]  ;;  %v1280_v44 = vld [vmem:[%s1639_s8 + $0x18] sm:$0xff]   ;;  %v1281_v45 = vld [vmem:[%s1639_s8 + $0x10] sm:$0xff]   ;;  %vm879_vm4 = vcmask 523264  }
  0x1e   : > { %1189 = vmatprep.subr.bf16.mxu0 %v1366_v2  ;;  %1195 = vmatprep.subr.bf16.mxu1 %v1366_v2  ;;  %s1160_s18 = sshll.u32 %s1511_s17, 4  ;;  %774 = vst.msk [vmem:[#allocation3] sm:$0xff] %vm744_vm3, %v1366_v2  ;;  %s1130_s28 = sshll.u32 %s1511_s17, 3  ;;  %v1279_v43 = vld [vmem:[%s1637_s6] sm:$0xff]   ;;  %v1282_v57 = vld [vmem:[%s1639_s8 + $0x8] sm:$0xff]  }
  0x1f   : > { %s504_s27 = scalar_lea.vmem %s1652_s0, %s1160_s18  ;;  %s511_s18 = scalar_lea.vmem %s1653_s1, %s1130_s28  ;;  %v1142_v50 = vld [vmem:[%s1655_s4] ss:$0 sm:$0xff] }
  0x20   : > { %v1131_v9 = vld [vmem:[%s504_s27 + $0x4] sm:$0xf]  ;;  %v530_v10 = vld [vmem:[%s504_s27] sm:$0xf]  ;;  %v1135_v11 = vld [vmem:[%s504_s27 + $0x8] sm:$0xf] }
  0x21   : > { %1180 = vmatmul.mubr.msk.bf16.vlgmr.msra.gmra.mxu0 %vm536_vm2, %v1131_v9  ;;  %1186 = vmatmul.mubr.msk.bf16.vlgmr.msra.gmra.mxu1 %vm536_vm2, %v530_v10  ;;  %v1138_v12 = vld [vmem:[%s504_s27 + $0xc] sm:$0xf]  ;;  %v740_v31 = vld [vmem:[%s511_s18] sm:$0xff]  ;;  %s1127_s18 = sshll.u32 %s494_s14, 3  ;;  %s1157_s28 = sshll.u32 %s1356_s24, 7 }
  0x22   : > { %1190 = vmatpush3.bf16.msra.mxu0 %v638_v7  ;;  %1196 = vmatpush3.bf16.msra.mxu1 %v689_v8  ;;  %v1143_v52 = vld [vmem:[%s1636_s5] ss:$0 sm:$0xff]  ;;  %s496_s30 = scalar_lea.vmem [#allocation4], %s1127_s18  ;;  %s983_s3 = scalar_lea.hbm %s1643_s12, %s1157_s28 }
  0x23   : > { %1191 = vmatprep.mubr.msk.bf16.mxu0 %vm1367_vm1, %v1366_v2  ;;  %1197 = vmatprep.mubr.msk.bf16.mxu1 %vm1367_vm1, %v1366_v2  ;;  %v1283_v58 = vld [vmem:[%s1639_s8] sm:$0xff]   ;;  %s985_s0 = sshll.u32 %s496_s30, 4  ;;  %s971_s4 = scalar_lea.sflag [#allocation5], %s494_s14  ;;  %s986_s0 = int_to_ptr.vmem [resolvable:$true] %s985_s0 }
  0x24   : > { %1201 = vmatprep.subr.bf16.mxu0 %v1366_v2  ;;  %1209 = vmatprep.subr.bf16.mxu1 %v1366_v2  ;;  %v1144_v59 = vld [vmem:[%s1638_s7] ss:$0 sm:$0xff]  ;;  %s1288_s19 = scalar_lea.vmem %s986_s0, 128  ;;  %s1292_s17 = sshll.u32 %s1368_s20, 4  ;;  %s1293_s17 = int_to_ptr.vmem [resolvable:$false] %s1292_s17 }
  0x25   : > { %v845_v4 = vld [vmem:[#allocation3] sm:$0xff]  ;;  %v1153_v10 = vld [vmem:[%s1640_s9] ss:$0 sm:$0xff]  ;;  %p1289_p12 = scmp.ne.s32.totalorder %s986_s0, %s1288_s19  ;;  %s1294_s24 = scalar_lea.vmem %s1293_s17, 256 }
  0x26   : > { %p1295_p1 = scmp.lt.s32.totalorder %s986_s0, %s1293_s17  ;;  %p1296_p2 = scmp.lt.s32.totalorder %s1294_s24, %s1288_s19 }
  0x27   : > { %p1290_p13 = pnand %p1289_p12, %p1474_p4 }
  0x28   : > { %p1297_p3 = por %p1296_p2, %p1295_p1 }
  0x29   : > { %1192 = vmatmul.mubr.msk.bf16.vlgmr.msra.gmra.mxu0 %vm536_vm2, %v1135_v11  ;;  %1198 = vmatmul.mubr.msk.bf16.vlgmr.msra.gmra.mxu1 %vm536_vm2, %v1138_v12  ;;  %p1291_p0 = pneg %p1290_p13 }
  0x2a   : > { %1205 = vmatprep.mubr.msk.bf16.mxu0 %vm1367_vm1, %v1366_v2  ;;  %1217 = vmatprep.mubr.msk.bf16.mxu1 %vm1367_vm1, %v1366_v2 }
  0x2b   : > { %1202 = vmatpush3.bf16.msra.mxu0 %v1278_v42  ;;  %1210 = vmatpush3.bf16.msra.mxu1 %v1280_v44  ;;  %p1298_p5 = pnand %p1297_p3, %p1291_p0 }
  0x2c   : > { %1203 = vmatprep.subr.bf16.mxu0 %v1366_v2  ;;  %1211 = vmatprep.subr.bf16.mxu1 %v1366_v2 }
  0x2f   : > { %1204 = vmatpush3.bf16.msra.mxu0 %v1279_v43  ;;  %1212 = vmatpush3.bf16.msra.mxu1 %v1281_v45 }
  0x30   : > { %1213 = vmatprep.subr.bf16.mxu1 %v1366_v2 }
  0x33   : > { %1214 = vmatpush3.bf16.msra.mxu1 %v1282_v57 }
  0x34   : > { %1215 = vmatprep.subr.bf16.mxu1 %v1366_v2 }
  0x37   : > { %1216 = vmatpush3.bf16.msra.mxu1 %v1283_v58 }
  0xe1   : > { %v578_v13 = vpop.f32.mrf.mxu0  ;;  %v624_v14 = vpop.f32.mrf.mxu1 }
  0xe2   : > { %v625_v21 = vadd.f32 %v624_v14, %v578_v13 }
  0xe3   : > { %v1181_v15 = vpop.f32.mrf.mxu0  ;;  %v1187_v16 = vpop.f32.mrf.mxu1 }
  0xe5   : > { %v581_v17 = vpop.f32.mrf.mxu0  ;;  %v627_v18 = vpop.f32.mrf.mxu1 }
  0xe7   : > { %v1182_v19 = vpop.f32.mrf.mxu0  ;;  %v1188_v20 = vpop.f32.mrf.mxu1 }
  0xe9   : > { %v674_v22 = vpop.f32.mrf.mxu0  ;;  %v725_v23 = vpop.f32.mrf.mxu1 }
  0xea   : > { %v680_v24 = vadd.f32 %v674_v22, %v625_v21 }
  0xeb   : > { %v1193_v26 = vpop.f32.mrf.mxu0  ;;  %v1199_v27 = vpop.f32.mrf.mxu1 }
  0xec   : > { %v731_v28 = vadd.f32 %v725_v23, %v680_v24  ;;  %v1154_v23 = vld [vmem:[%s1641_s10] ss:$0 sm:$0xff] }
  0xed   : > { %v677_v29 = vpop.f32.mrf.mxu0  ;;  %v728_v30 = vpop.f32.mrf.mxu1 }
  0xee   : > { %v739_v32 = vadd.f32 %v1141_v25, %v731_v28  ;;  %v1155_v25 = vld [vmem:[%s1642_s11] ss:$0 sm:$0xff] }
  0xef   : > { %v1194_v33 = vpop.f32.mrf.mxu0  ;;  %v1200_v34 = vpop.f32.mrf.mxu1 }
  0xf0   : > { %v741_v35 = vadd.f32 %v740_v31, %v739_v32 }
  0xf2   : > { %v745_v36 = vsel %vm744_vm3, %v741_v35, 0.0 }
  0xf3   : > { %746 = vadd.xlane.f32.xlu0 %v745_v36 }
 0x17c   : > { %v747_v37 = vpop.xlane.xlu0 %746 }
 0x17d   : > { %v749_v38 = vmul.f32 0.03125, %v747_v37 }
 0x17f   : > { %v750_v39 = vsub.f32 %v741_v35, %v749_v38 }
 0x181   : > { %v751_v40 = vmul.f32 %v750_v39, %v750_v39 }
 0x183   : > { %v752_v41 = vsel %vm744_vm3, %v751_v40, 0.0 }
 0x184   : > { %753 = vadd.xlane.f32.xlu0 %v752_v41 }
 0x20d   : > { %v754_v46 = vpop.xlane.xlu0 %753 }
 0x20e   : > { %v755_v47 = vmul.f32 0.03125, %v754_v46 }
 0x210   : > { %v756_v48 = vadd.f32 1e-05, %v755_v47 }
 0x212   : > { %1284 = vrsqrt.f32 %v756_v48 }
 0x21f   : > { %v1285_v49 = vpop.eup %1284 }
 0x220   : > { %v758_v51 = vmul.f32 %v1285_v49, %v750_v39 }
 0x222   : > { %v765_v53 = vmul.f32 %v1142_v50, %v758_v51 }
 0x224   : > { %v772_v54 = vadd.f32 %v1143_v52, %v765_v53 }
 0x226   : > { %773 = vst.msk [vmem:[#allocation2] sm:$0xff] %vm744_vm3, %v772_v54 }
 0x22d   : > { %v775_v55 = vld [vmem:[#allocation2] sm:$0xff] }
 0x22e   : > { %v776_v56 = vpack.c.bf16 %v775_v55, %v775_v55 }
 0x230   : > { %1206 = vmatmul.mubr.msk.bf16.vlgmr.msra.gmra.mxu0 %vm744_vm3, %v776_v56 }
 0x2f0   : > { %v838_v60 = vpop.f32.mrf.mxu0 }
 0x2f1   : > { %v839_v61 = vadd.f32 %v1144_v59, %v838_v60 }
 0x2f2   : > { %v1207_v62 = vpop.f32.mrf.mxu0 }
 0x2f3   : > { %v844_v63 = vmax.f32 %v839_v61, 0.0 }
 0x2f4   : > { %v841_v0 = vpop.f32.mrf.mxu0 }
 0x2f5   : > { %v846_v1 = vpack.c.bf16 %v844_v63, %v844_v63 }
 0x2f6   : > { %v1208_v3 = vpop.f32.mrf.mxu0 }
 0x2f7   : > { %1218 = vmatmul.mubr.msk.bf16.vlgmr.msra.gmra.mxu1 %vm879_vm4, %v846_v1 }
 0x3b7   : > { %v917_v2 = vpop.f32.mrf.mxu1 }
 0x3b8   : > { %v923_v5 = vadd.f32 %v917_v2, %v845_v4 }
 0x3b9   : > { %v1219_v6 = vpop.f32.mrf.mxu1 }
 0x3ba   : > { %924 = vst.msk [vmem:[#allocation3] sm:$0xff] %vm744_vm3, %v923_v5 }
 0x3bb   : > { %v920_v7 = vpop.f32.mrf.mxu1 }
 0x3bd   : > { %v1220_v8 = vpop.f32.mrf.mxu1 }
 0x3c1   : > { %v929_v9 = vld [vmem:[#allocation3] sm:$0xff] }
 0x3c2   : > { %v930_v11 = vadd.f32 %v929_v9, %v775_v55 }
 0x3c4   : > { %v938_v12 = vadd.f32 %v1153_v10, %v930_v11 }
 0x3c6   : > { %v941_v13 = vsel %vm744_vm3, %v938_v12, 0.0 }
 0x3c7   : > { %942 = vadd.xlane.f32.xlu1 %v941_v13 }
 0x450   : > { %v943_v14 = vpop.xlane.xlu1 %942 }
 0x451   : > { %v945_v15 = vmul.f32 0.03125, %v943_v14 }
 0x453   : > { %v946_v16 = vsub.f32 %v938_v12, %v945_v15 }
 0x455   : > { %v947_v17 = vmul.f32 %v946_v16, %v946_v16 }
 0x457   : > { %v948_v18 = vsel %vm744_vm3, %v947_v17, 0.0 }
 0x458   : > { %949 = vadd.xlane.f32.xlu1 %v948_v18 }
 0x4e1   : > { %v950_v19 = vpop.xlane.xlu1 %949 }
 0x4e2   : > { %v951_v20 = vmul.f32 0.03125, %v950_v19 }
 0x4e4   : > { %v952_v21 = vadd.f32 1e-05, %v951_v20 }
 0x4e6   : > { %1286 = vrsqrt.f32 %v952_v21 }
 0x4f3   : > { %v1287_v22 = vpop.eup %1286 }
 0x4f4   : > { %v954_v24 = vmul.f32 %v1287_v22, %v946_v16 }
 0x4f6   : > { %v961_v26 = vmul.f32 %v1154_v23, %v954_v24 }
 0x4f8   : > { %v968_v27 = vadd.f32 %v1155_v25, %v961_v26 }
 0x4fa   : > { %969 = vst.msk [vmem:[%s496_s30] sm:$0xff] %vm744_vm3, %v968_v27 }
 0x4fb   : > { %1301 = shalt.err (!%p1298_p5)
}
 0x4fc   : > { %s1302_s1 = scalar_lea.hbm %s983_s3, 128  ;;  %s1306_s18 = scalar_lea.hbm %s1643_s12, 256 }
 0x4fd   : > { %p1303_p6 = scmp.ne.s32.totalorder %s983_s3, %s1302_s1  ;;  %p1307_p10 = scmp.lt.s32.totalorder %s983_s3, %s1643_s12 }
 0x4fe   : > { %p1308_p11 = scmp.lt.s32.totalorder %s1306_s18, %s1302_s1 }
 0x4ff   : > { %p1304_p7 = pnand %p1303_p6, %p1474_p4 }
 0x500   : > { %p1309_p12 = por %p1308_p11, %p1307_p10 }
 0x501   : > { %p1305_p9 = pneg %p1304_p7 }
 0x503   : > { %p1310_p13 = pnand %p1309_p12, %p1305_p9 }
 0x505   : > { %1313 = shalt.err (!%p1310_p13)
}
 0x506   : > { %1221 = dma.vmem_to_hbm [thread:$0]  (%p1474_p4), %s986_s0, 128, %s983_s3, %s971_s4  }
 0x507 PF: > { %p1227_p0 = scmp.ge.s32.totalorder %s1364_s26, 2  ;;  %s997_s30 = sand.u32 1, %s1344_s21  }
 0x508   : > { %s998_s19 = scalar_lea.sflag [#allocation5], %s997_s30 }
 0x509   : > { %p1224_p1 = pnand %p1227_p0, %p1481_p8 }
 0x50b   : > { %p1225_p2 = pneg %p1224_p1 }
 0x50d   : > { %1339 = dma.done.wait (%p1225_p2), %s998_s19, 128  }
 0x50e   : > { %1341 = vsyncadd (%p1225_p2), %s998_s19, 4294967168  ;;  %s25_s26 = sadd.s32 1, %s1364_s26   ;;  %s1656_s21 = smov %s1348_s22 }
 0x50f   : > { %p22_p3 = scmp.ge.s32.totalorder %s25_s26, 4   ;;  %s1657_s22 = smov %s1352_s23 }
 0x510   : > { %s1658_s23 = smov %s1487_s16  ;;  %s1659_s24 = smov %s1360_s25 }
 0x511   : > { %s1660_s25 = smov %s1662_s29  ;;  %24 = sbr.rel (!%p22_p3) target bundleno = 10 (0xa), region = 129 }
 0x516   :  { %1003 = vsyncpa [#allocation5], 1 }
 0x517   :  { %1005 = vsyncpa [#allocation5 + $0x1], 1 }

</bundles_post_ra>
